<compile_context>
chip_gen: v5e
topology: v5e:2x2
jax: 0.10.0
libtpu: 0.0.40
codegen_flags: <defaults>
</compile_context>

<pallas_src>
import numpy as np
import jax
import jax.numpy as jnp
from jax.experimental import pallas as pl
from jax.experimental.pallas import tpu as pltpu

# ----------------------------- config ------------------------------------
SEQ_LEN = 8          # seq_len
INPUT_DIM = 16       # input_dim
HIDDENS = (32, 16)   # hiddens
NUM_INDUCING = 32    # num_inducing_points
BATCH = 2

H1, H2 = HIDDENS
FEAT_DIM = 2 * H2
BP = 8               # batch padded to one sublane tile
TBP = SEQ_LEN * BP   # time-major rows after padding

# --- packed parameter slab layout (row offsets, all multiples of 8) -------
OFF_W1    = 0      # (INPUT_DIM, H1) = (16, 32)
OFF_W2    = 16     # (H1, H2)        = (32, 16)
OFF_WIH   = 48     # (H2, 3*H2)      = (16, 48)   fused input-hidden gates
OFF_WHH   = 64     # (H2, 3*H2)      = (16, 48)   fused hidden-hidden gates
OFF_ZET   = 80     # (H2, M)         = (16, 32)   z_e^T
OFF_ZHT   = 96     # (H2, M)         = (16, 32)   z_h^T
OFF_ALPHA = 112    # (M, 1)          = (32, 1)    outputscale * Kzz^{-1} m
OFF_MIXT  = 144    # (BP, T*BP)      = (8, 64)    likelihood mixing matrix^T
OFF_B1    = 152    # (1, H1)
OFF_B2    = 160    # (1, H2)
OFF_BGI   = 168    # (1, 3*H2)  bih + [bhh_r, bhh_z, 0]
OFF_BHN   = 176    # (1, H2)    bhh_n
OFF_ZSQ   = 184    # (1, M)     sum(z*z, -1)
SLAB_ROWS = 192
SLAB_LANES = 128


def _elu(x):
    # ELU(alpha=1); clamp the exp argument so the discarded branch never overflows.
    return jnp.where(x > 0, x, jnp.exp(jnp.minimum(x, 0.0)) - 1.0)


# ----------------------------- kernel ------------------------------------
def dgp_kernel(obs_ref, slab_ref, sc_ref, out_ref):
    inv = sc_ref[0]      # -0.5 / lengthscale^2
    const = sc_ref[1]    # const_mean * sum(mix)

    # static views into the packed parameter slab
    w1      = slab_ref[OFF_W1:OFF_W1 + INPUT_DIM, 0:H1]
    w2      = slab_ref[OFF_W2:OFF_W2 + H1, 0:H2]
    wih     = slab_ref[OFF_WIH:OFF_WIH + H2, 0:3 * H2]
    whh     = slab_ref[OFF_WHH:OFF_WHH + H2, 0:3 * H2]
    z_eT    = slab_ref[OFF_ZET:OFF_ZET + H2, 0:NUM_INDUCING]
    z_hT    = slab_ref[OFF_ZHT:OFF_ZHT + H2, 0:NUM_INDUCING]
    alpha   = slab_ref[OFF_ALPHA:OFF_ALPHA + NUM_INDUCING, 0:1]
    mixT    = slab_ref[OFF_MIXT:OFF_MIXT + BP, 0:TBP]
    b1      = slab_ref[OFF_B1:OFF_B1 + 1, 0:H1]
    b2      = slab_ref[OFF_B2:OFF_B2 + 1, 0:H2]
    bias_gi = slab_ref[OFF_BGI:OFF_BGI + 1, 0:3 * H2]
    bhh_n   = slab_ref[OFF_BHN:OFF_BHN + 1, 0:H2]
    z_sq    = slab_ref[OFF_ZSQ:OFF_ZSQ + 1, 0:NUM_INDUCING]

    # ---- batched MLP encoder over all T*BP rows (2 matmuls total) ----
    x = obs_ref[...]                                                     # (TBP, D)
    h1 = _elu(jnp.dot(x, w1, preferred_element_type=jnp.float32) + b1)
    e_all = _elu(jnp.dot(h1, w2, preferred_element_type=jnp.float32) + b2)   # (TBP, H2)

    # ---- fused input-hidden GRU gates for all steps (one matmul),
    #      with bih and the r/z thirds of bhh pre-folded into the bias ----
    gi_all = (jnp.dot(e_all, wih, preferred_element_type=jnp.float32)
              + bias_gi)                                                 # (TBP, 3H2)

    # ---- GRU recurrence: one matmul + one sigmoid + one tanh per step ----
    bhh_n_b = jnp.broadcast_to(bhh_n, (BP, H2))                          # hoisted
    h = jnp.zeros((BP, H2), jnp.float32)
    hs = []
    for t in range(SEQ_LEN):                                             # static unroll
        gi = gi_all[t * BP:(t + 1) * BP, :]                              # full-tile slice
        gh = jnp.dot(h, whh, preferred_element_type=jnp.float32)        # (BP, 3H2)
        rz = jax.nn.sigmoid(gi[:, 0:2 * H2] + gh[:, 0:2 * H2])          # fused r/z
        r = rz[:, 0:H2]
        zg = rz[:, H2:2 * H2]
        n = jnp.tanh(gi[:, 2 * H2:3 * H2]
                     + r * (gh[:, 2 * H2:3 * H2] + bhh_n_b))
        h = (1.0 - zg) * n + zg * h                                      # (BP, H2)
        hs.append(h)
    h_all = jnp.concatenate(hs, axis=0)                                  # (TBP, H2)

    # ---- deferred SVGP posterior mean, one batched evaluation ----
    x_sq = (jnp.sum(e_all * e_all, axis=-1, keepdims=True)
            + jnp.sum(h_all * h_all, axis=-1, keepdims=True))            # (TBP, 1)
    cross = (jnp.dot(e_all, z_eT, preferred_element_type=jnp.float32)
             + jnp.dot(h_all, z_hT, preferred_element_type=jnp.float32))  # (TBP, M)
    d2 = jnp.maximum(x_sq + z_sq - 2.0 * cross, 0.0)
    kexp = jnp.exp(inv * d2)                           # outputscale folded into alpha

    # ---- Gaussian likelihood mixing: two tiny matmuls, lane-dense output ----
    tmp = jnp.dot(mixT, kexp, preferred_element_type=jnp.float32)        # (BP, M)
    res = jnp.dot(tmp, alpha, preferred_element_type=jnp.float32)        # (BP, 1)
    out_ref[...] = jnp.broadcast_to(res + const, (BP, 128))              # full-tile store


# ----------------------------- wrapper -----------------------------------
def _rbf(a, b, ls, osc):
    a2 = jnp.sum(a * a, -1, keepdims=True)
    b2 = jnp.sum(b * b, -1)[None, :]
    d2 = jnp.maximum(a2 + b2 - 2.0 * a @ b.T, 0.0)
    return osc * jnp.exp(-0.5 * d2 / (ls * ls))


def init_params(key):
    ks = jax.random.split(key, 11)
    s = 0.3
    p = dict(
        w1=jax.random.normal(ks[0], (INPUT_DIM, H1), jnp.float32) * s,
        b1=jax.random.normal(ks[1], (1, H1), jnp.float32) * 0.1,
        w2=jax.random.normal(ks[2], (H1, H2), jnp.float32) * s,
        b2=jax.random.normal(ks[3], (1, H2), jnp.float32) * 0.1,
        wih=jax.random.normal(ks[4], (3, H2, H2), jnp.float32) * s,
        whh=jax.random.normal(ks[5], (3, H2, H2), jnp.float32) * s,
        bih=jax.random.normal(ks[6], (3, 1, H2), jnp.float32) * 0.1,
        bhh=jax.random.normal(ks[7], (3, 1, H2), jnp.float32) * 0.1,
        z=jax.random.normal(ks[8], (NUM_INDUCING, FEAT_DIM), jnp.float32),
        var_mean=jax.random.normal(ks[9], (NUM_INDUCING,), jnp.float32) * 0.5,
        mix=jax.random.normal(ks[10], (SEQ_LEN,), jnp.float32) / SEQ_LEN,
        gp=jnp.array([1.5, 1.0, 0.1], jnp.float32),  # lengthscale, outputscale, const_mean
    )
    return p


def _precompute_alpha(p):
    # Glue: tiny (M, M) solve for Kzz^{-1} m, done in plain JAX.
    ls, osc, _ = p['gp']
    kzz = _rbf(p['z'], p['z'], ls, osc) + 1e-3 * jnp.eye(NUM_INDUCING, dtype=jnp.float32)
    return jnp.linalg.solve(kzz, p['var_mean'])[:, None]     # (M, 1)


def _build_slab(p, alpha):
    """Pack all reusable parameters into one lane-padded f32 slab + 2 scalars."""
    ls, osc, cmean = p['gp']

    # fuse the three GRU gate weights into (H2, 3*H2) so each step is 1 matmul
    wih_f = jnp.transpose(p['wih'], (1, 0, 2)).reshape(H2, 3 * H2)
    whh_f = jnp.transpose(p['whh'], (1, 0, 2)).reshape(H2, 3 * H2)
    bih_f = jnp.transpose(p['bih'], (1, 0, 2)).reshape(1, 3 * H2)
    bhh_f = jnp.transpose(p['bhh'], (1, 0, 2)).reshape(1, 3 * H2)
    # fold the r/z thirds of bhh into the batched gi bias; keep bhh_n separate
    bias_gi = bih_f + jnp.concatenate(
        [bhh_f[:, 0:2 * H2], jnp.zeros((1, H2), jnp.float32)], axis=1)
    bhh_n = bhh_f[:, 2 * H2:3 * H2]

    # pre-transposed / pre-reduced inducing points, outputscale folded into alpha
    z = p['z']
    z_eT = z[:, 0:H2].T
    z_hT = z[:, H2:2 * H2].T
    z_sq = jnp.sum(z * z, axis=-1)[None, :]
    alpha_s = osc * alpha

    # mixing matrix^T over the PADDED batch: padded rows get zero weight columns
    mixT = jnp.kron(p['mix'][None, :], jnp.eye(BP, dtype=jnp.float32))   # (BP, T*BP)

    slab = jnp.zeros((SLAB_ROWS, SLAB_LANES), jnp.float32)
    slab = slab.at[OFF_W1:OFF_W1 + INPUT_DIM, 0:H1].set(p['w1'])
    slab = slab.at[OFF_W2:OFF_W2 + H1, 0:H2].set(p['w2'])
    slab = slab.at[OFF_WIH:OFF_WIH + H2, 0:3 * H2].set(wih_f)
    slab = slab.at[OFF_WHH:OFF_WHH + H2, 0:3 * H2].set(whh_f)
    slab = slab.at[OFF_ZET:OFF_ZET + H2, 0:NUM_INDUCING].set(z_eT)
    slab = slab.at[OFF_ZHT:OFF_ZHT + H2, 0:NUM_INDUCING].set(z_hT)
    slab = slab.at[OFF_ALPHA:OFF_ALPHA + NUM_INDUCING, 0:1].set(alpha_s)
    slab = slab.at[OFF_MIXT:OFF_MIXT + BP, 0:TBP].set(mixT)
    slab = slab.at[OFF_B1:OFF_B1 + 1, 0:H1].set(p['b1'])
    slab = slab.at[OFF_B2:OFF_B2 + 1, 0:H2].set(p['b2'])
    slab = slab.at[OFF_BGI:OFF_BGI + 1, 0:3 * H2].set(bias_gi)
    slab = slab.at[OFF_BHN:OFF_BHN + 1, 0:H2].set(bhh_n)
    slab = slab.at[OFF_ZSQ:OFF_ZSQ + 1, 0:NUM_INDUCING].set(z_sq)

    sc = jnp.stack([-0.5 / (ls * ls), cmean * jnp.sum(p['mix'])]).astype(jnp.float32)
    return slab, sc


def dgp_forward(obs, p):
    """obs: (B, T, D) float32  ->  pred: (B,) float32 (regression mean)."""
    B, T, D = obs.shape
    alpha = _precompute_alpha(p)
    slab, sc = _build_slab(p, alpha)

    # time-major, batch padded to one sublane tile (zero rows); contiguous row blocks
    obs_p = jnp.zeros((BP, T, D), obs.dtype).at[:B].set(obs)
    obs_flat = jnp.transpose(obs_p, (1, 0, 2)).reshape(T * BP, D)

    vmem = pl.BlockSpec(memory_space=pltpu.MemorySpace.VMEM)
    smem = pl.BlockSpec(memory_space=pltpu.MemorySpace.SMEM)
    out = pl.pallas_call(
        dgp_kernel,
        out_shape=jax.ShapeDtypeStruct((BP, 128), jnp.float32),
        in_specs=[vmem, vmem, smem],
        out_specs=vmem,
    )(obs_flat, slab, sc)
    return out[:B, 0]


# ----------------------------- reference ---------------------------------
def reference_forward(obs, p):
    alpha = _precompute_alpha(p)
    ls, osc, cmean = p['gp']
    obs_t = jnp.transpose(obs, (1, 0, 2))
    B = obs.shape[0]
    h = jnp.zeros((B, H2), jnp.float32)
    acc = jnp.zeros((B, 1), jnp.float32)
    z_sq = jnp.sum(p['z'] * p['z'], -1)[None, :]
    for t in range(SEQ_LEN):
        x_t = obs_t[t]
        h1 = _elu(x_t @ p['w1'] + p['b1'])
        e_t = _elu(h1 @ p['w2'] + p['b2'])
        gi = [e_t @ p['wih'][i] + p['bih'][i] for i in range(3)]
        gh = [h @ p['whh'][i] + p['bhh'][i] for i in range(3)]
        r = jax.nn.sigmoid(gi[0] + gh[0])
        zg = jax.nn.sigmoid(gi[1] + gh[1])
        n = jnp.tanh(gi[2] + r * gh[2])
        h = (1.0 - zg) * n + zg * h
        feat = jnp.concatenate([e_t, h], axis=-1)
        x_sq = jnp.sum(feat * feat, -1, keepdims=True)
        d2 = jnp.maximum(x_sq + z_sq - 2.0 * feat @ p['z'].T, 0.0)
        k_xz = osc * jnp.exp(-0.5 * d2 / (ls * ls))
        f_t = cmean + k_xz @ alpha
        acc = acc + p['mix'][t] * f_t
    return acc[:, 0]


# ------------------------------- main ------------------------------------
if __name__ == "__main__":
    key = jax.random.PRNGKey(0)
    k_obs, k_par = jax.random.split(key)
    obs = jax.random.normal(k_obs, (BATCH, SEQ_LEN, INPUT_DIM), jnp.float32)
    params = init_params(k_par)

    pred = jax.block_until_ready(dgp_forward(obs, params))
    ref = jax.block_until_ready(reference_forward(obs, params))

    np.testing.assert_allclose(np.asarray(pred), np.asarray(ref),
                               rtol=2e-5, atol=2e-5)
    print("KERNEL_OK")
</pallas_src>

<mosaic_0001>
module attributes {stable_mosaic.version = 11 : i64} {
  func.func @dgp_kernel(%arg0: memref<64x16xf32, #tpu.memory_space<vmem>>, %arg1: memref<192x128xf32, #tpu.memory_space<vmem>>, %arg2: memref<2xf32, #tpu.memory_space<smem>>, %arg3: memref<8x128xf32, #tpu.memory_space<vmem>>) attributes {dimension_semantics = [], scalar_prefetch = 0 : i64, scratch_operands = 0 : i64, tpu.core_type = #tpu.core_type<tc>} {
    %c0 = arith.constant 0 : index
    %0 = memref.load %arg2[%c0] : memref<2xf32, #tpu.memory_space<smem>>
    %c1 = arith.constant 1 : index
    %1 = memref.load %arg2[%c1] : memref<2xf32, #tpu.memory_space<smem>>
    %c0_0 = arith.constant 0 : index
    %c0_1 = arith.constant 0 : index
    %2 = vector.load %arg1[%c0_0, %c0_1] : memref<192x128xf32, #tpu.memory_space<vmem>>, vector<16x32xf32>
    %c16 = arith.constant 16 : index
    %c0_2 = arith.constant 0 : index
    %3 = vector.load %arg1[%c16, %c0_2] : memref<192x128xf32, #tpu.memory_space<vmem>>, vector<32x16xf32>
    %c48 = arith.constant 48 : index
    %c0_3 = arith.constant 0 : index
    %4 = vector.load %arg1[%c48, %c0_3] : memref<192x128xf32, #tpu.memory_space<vmem>>, vector<16x48xf32>
    %c64 = arith.constant 64 : index
    %c0_4 = arith.constant 0 : index
    %5 = vector.load %arg1[%c64, %c0_4] : memref<192x128xf32, #tpu.memory_space<vmem>>, vector<16x48xf32>
    %c80 = arith.constant 80 : index
    %c0_5 = arith.constant 0 : index
    %6 = vector.load %arg1[%c80, %c0_5] : memref<192x128xf32, #tpu.memory_space<vmem>>, vector<16x32xf32>
    %c96 = arith.constant 96 : index
    %c0_6 = arith.constant 0 : index
    %7 = vector.load %arg1[%c96, %c0_6] : memref<192x128xf32, #tpu.memory_space<vmem>>, vector<16x32xf32>
    %c112 = arith.constant 112 : index
    %c0_7 = arith.constant 0 : index
    %8 = vector.load %arg1[%c112, %c0_7] : memref<192x128xf32, #tpu.memory_space<vmem>>, vector<32x1xf32>
    %c144 = arith.constant 144 : index
    %c0_8 = arith.constant 0 : index
    %9 = vector.load %arg1[%c144, %c0_8] : memref<192x128xf32, #tpu.memory_space<vmem>>, vector<8x64xf32>
    %c152 = arith.constant 152 : index
    %c0_9 = arith.constant 0 : index
    %10 = vector.load %arg1[%c152, %c0_9] : memref<192x128xf32, #tpu.memory_space<vmem>>, vector<1x32xf32>
    %c160 = arith.constant 160 : index
    %c0_10 = arith.constant 0 : index
    %11 = vector.load %arg1[%c160, %c0_10] : memref<192x128xf32, #tpu.memory_space<vmem>>, vector<1x16xf32>
    %c168 = arith.constant 168 : index
    %c0_11 = arith.constant 0 : index
    %12 = vector.load %arg1[%c168, %c0_11] : memref<192x128xf32, #tpu.memory_space<vmem>>, vector<1x48xf32>
    %c176 = arith.constant 176 : index
    %c0_12 = arith.constant 0 : index
    %13 = vector.load %arg1[%c176, %c0_12] : memref<192x128xf32, #tpu.memory_space<vmem>>, vector<1x16xf32>
    %c184 = arith.constant 184 : index
    %c0_13 = arith.constant 0 : index
    %14 = vector.load %arg1[%c184, %c0_13] : memref<192x128xf32, #tpu.memory_space<vmem>>, vector<1x32xf32>
    %c0_14 = arith.constant 0 : index
    %c0_15 = arith.constant 0 : index
    %15 = vector.load %arg0[%c0_14, %c0_15] : memref<64x16xf32, #tpu.memory_space<vmem>>, vector<64x16xf32>
    %cst = arith.constant dense<0.000000e+00> : vector<64x32xf32>
    %16 = tpu.matmul %15, %2, %cst {dimension_numbers = #tpu.dot_dimension_numbers<[1], [0], [0], [1], [0, 0, 1, 1], [], []>} : vector<64x16xf32>, vector<16x32xf32>, vector<64x32xf32> -> vector<64x32xf32>
    %17 = vector.broadcast %10 : vector<1x32xf32> to vector<64x32xf32>
    %18 = arith.addf %16, %17 : vector<64x32xf32>
    %cst_16 = arith.constant 0.000000e+00 : f32
    %19 = vector.broadcast %cst_16 : f32 to vector<64x32xf32>
    %20 = arith.cmpf ogt, %18, %19 : vector<64x32xf32>
    %cst_17 = arith.constant 0.000000e+00 : f32
    %21 = vector.broadcast %cst_17 : f32 to vector<64x32xf32>
    %22 = arith.minimumf %18, %21 : vector<64x32xf32>
    %23 = math.exp %22 : vector<64x32xf32>
    %cst_18 = arith.constant 1.000000e+00 : f32
    %24 = vector.broadcast %cst_18 : f32 to vector<64x32xf32>
    %25 = arith.subf %23, %24 : vector<64x32xf32>
    %26 = arith.select %20, %18, %25 : vector<64x32xi1>, vector<64x32xf32>
    %cst_19 = arith.constant dense<0.000000e+00> : vector<64x16xf32>
    %27 = tpu.matmul %26, %3, %cst_19 {dimension_numbers = #tpu.dot_dimension_numbers<[1], [0], [0], [1], [0, 0, 1, 1], [], []>} : vector<64x32xf32>, vector<32x16xf32>, vector<64x16xf32> -> vector<64x16xf32>
    %28 = vector.broadcast %11 : vector<1x16xf32> to vector<64x16xf32>
    %29 = arith.addf %27, %28 : vector<64x16xf32>
    %cst_20 = arith.constant 0.000000e+00 : f32
    %30 = vector.broadcast %cst_20 : f32 to vector<64x16xf32>
    %31 = arith.cmpf ogt, %29, %30 : vector<64x16xf32>
    %cst_21 = arith.constant 0.000000e+00 : f32
    %32 = vector.broadcast %cst_21 : f32 to vector<64x16xf32>
    %33 = arith.minimumf %29, %32 : vector<64x16xf32>
    %34 = math.exp %33 : vector<64x16xf32>
    %cst_22 = arith.constant 1.000000e+00 : f32
    %35 = vector.broadcast %cst_22 : f32 to vector<64x16xf32>
    %36 = arith.subf %34, %35 : vector<64x16xf32>
    %37 = arith.select %31, %29, %36 : vector<64x16xi1>, vector<64x16xf32>
    %cst_23 = arith.constant dense<0.000000e+00> : vector<64x48xf32>
    %38 = tpu.matmul %37, %4, %cst_23 {dimension_numbers = #tpu.dot_dimension_numbers<[1], [0], [0], [1], [0, 0, 1, 1], [], []>} : vector<64x16xf32>, vector<16x48xf32>, vector<64x48xf32> -> vector<64x48xf32>
    %39 = vector.broadcast %12 : vector<1x48xf32> to vector<64x48xf32>
    %40 = arith.addf %38, %39 : vector<64x48xf32>
    %41 = vector.shape_cast %13 : vector<1x16xf32> to vector<1x16xf32>
    %42 = vector.broadcast %41 : vector<1x16xf32> to vector<8x16xf32>
    %cst_24 = arith.constant 0.000000e+00 : f32
    %43 = vector.broadcast %cst_24 : f32 to vector<8x16xf32>
    %44 = vector.extract_strided_slice %40 {offsets = [0, 0], sizes = [8, 48], strides = [1, 1]} : vector<64x48xf32> to vector<8x48xf32>
    %cst_25 = arith.constant dense<0.000000e+00> : vector<8x48xf32>
    %45 = tpu.matmul %43, %5, %cst_25 {dimension_numbers = #tpu.dot_dimension_numbers<[1], [0], [0], [1], [0, 0, 1, 1], [], []>} : vector<8x16xf32>, vector<16x48xf32>, vector<8x48xf32> -> vector<8x48xf32>
    %46 = vector.extract_strided_slice %44 {offsets = [0, 0], sizes = [8, 32], strides = [1, 1]} : vector<8x48xf32> to vector<8x32xf32>
    %47 = vector.extract_strided_slice %45 {offsets = [0, 0], sizes = [8, 32], strides = [1, 1]} : vector<8x48xf32> to vector<8x32xf32>
    %48 = arith.addf %46, %47 : vector<8x32xf32>
    %49 = arith.negf %48 : vector<8x32xf32>
    %50 = math.exp %49 : vector<8x32xf32>
    %cst_26 = arith.constant 1.000000e+00 : f32
    %51 = vector.broadcast %cst_26 : f32 to vector<8x32xf32>
    %52 = arith.addf %51, %50 : vector<8x32xf32>
    %53 = arith.divf %51, %52 : vector<8x32xf32>
    %54 = vector.extract_strided_slice %53 {offsets = [0, 0], sizes = [8, 16], strides = [1, 1]} : vector<8x32xf32> to vector<8x16xf32>
    %55 = vector.extract_strided_slice %53 {offsets = [0, 16], sizes = [8, 16], strides = [1, 1]} : vector<8x32xf32> to vector<8x16xf32>
    %56 = vector.extract_strided_slice %44 {offsets = [0, 32], sizes = [8, 16], strides = [1, 1]} : vector<8x48xf32> to vector<8x16xf32>
    %57 = vector.extract_strided_slice %45 {offsets = [0, 32], sizes = [8, 16], strides = [1, 1]} : vector<8x48xf32> to vector<8x16xf32>
    %58 = arith.addf %57, %42 : vector<8x16xf32>
    %59 = arith.mulf %54, %58 : vector<8x16xf32>
    %60 = arith.addf %56, %59 : vector<8x16xf32>
    %61 = math.tanh %60 : vector<8x16xf32>
    %cst_27 = arith.constant 1.000000e+00 : f32
    %62 = vector.broadcast %cst_27 : f32 to vector<8x16xf32>
    %63 = arith.subf %62, %55 : vector<8x16xf32>
    %64 = arith.mulf %63, %61 : vector<8x16xf32>
    %65 = arith.mulf %55, %43 : vector<8x16xf32>
    %66 = arith.addf %64, %65 : vector<8x16xf32>
    %67 = vector.extract_strided_slice %40 {offsets = [8, 0], sizes = [8, 48], strides = [1, 1]} : vector<64x48xf32> to vector<8x48xf32>
    %cst_28 = arith.constant dense<0.000000e+00> : vector<8x48xf32>
    %68 = tpu.matmul %66, %5, %cst_28 {dimension_numbers = #tpu.dot_dimension_numbers<[1], [0], [0], [1], [0, 0, 1, 1], [], []>} : vector<8x16xf32>, vector<16x48xf32>, vector<8x48xf32> -> vector<8x48xf32>
    %69 = vector.extract_strided_slice %67 {offsets = [0, 0], sizes = [8, 32], strides = [1, 1]} : vector<8x48xf32> to vector<8x32xf32>
    %70 = vector.extract_strided_slice %68 {offsets = [0, 0], sizes = [8, 32], strides = [1, 1]} : vector<8x48xf32> to vector<8x32xf32>
    %71 = arith.addf %69, %70 : vector<8x32xf32>
    %72 = arith.negf %71 : vector<8x32xf32>
    %73 = math.exp %72 : vector<8x32xf32>
    %cst_29 = arith.constant 1.000000e+00 : f32
    %74 = vector.broadcast %cst_29 : f32 to vector<8x32xf32>
    %75 = arith.addf %74, %73 : vector<8x32xf32>
    %76 = arith.divf %74, %75 : vector<8x32xf32>
    %77 = vector.extract_strided_slice %76 {offsets = [0, 0], sizes = [8, 16], strides = [1, 1]} : vector<8x32xf32> to vector<8x16xf32>
    %78 = vector.extract_strided_slice %76 {offsets = [0, 16], sizes = [8, 16], strides = [1, 1]} : vector<8x32xf32> to vector<8x16xf32>
    %79 = vector.extract_strided_slice %67 {offsets = [0, 32], sizes = [8, 16], strides = [1, 1]} : vector<8x48xf32> to vector<8x16xf32>
    %80 = vector.extract_strided_slice %68 {offsets = [0, 32], sizes = [8, 16], strides = [1, 1]} : vector<8x48xf32> to vector<8x16xf32>
    %81 = arith.addf %80, %42 : vector<8x16xf32>
    %82 = arith.mulf %77, %81 : vector<8x16xf32>
    %83 = arith.addf %79, %82 : vector<8x16xf32>
    %84 = math.tanh %83 : vector<8x16xf32>
    %cst_30 = arith.constant 1.000000e+00 : f32
    %85 = vector.broadcast %cst_30 : f32 to vector<8x16xf32>
    %86 = arith.subf %85, %78 : vector<8x16xf32>
    %87 = arith.mulf %86, %84 : vector<8x16xf32>
    %88 = arith.mulf %78, %66 : vector<8x16xf32>
    %89 = arith.addf %87, %88 : vector<8x16xf32>
    %90 = vector.extract_strided_slice %40 {offsets = [16, 0], sizes = [8, 48], strides = [1, 1]} : vector<64x48xf32> to vector<8x48xf32>
    %cst_31 = arith.constant dense<0.000000e+00> : vector<8x48xf32>
    %91 = tpu.matmul %89, %5, %cst_31 {dimension_numbers = #tpu.dot_dimension_numbers<[1], [0], [0], [1], [0, 0, 1, 1], [], []>} : vector<8x16xf32>, vector<16x48xf32>, vector<8x48xf32> -> vector<8x48xf32>
    %92 = vector.extract_strided_slice %90 {offsets = [0, 0], sizes = [8, 32], strides = [1, 1]} : vector<8x48xf32> to vector<8x32xf32>
    %93 = vector.extract_strided_slice %91 {offsets = [0, 0], sizes = [8, 32], strides = [1, 1]} : vector<8x48xf32> to vector<8x32xf32>
    %94 = arith.addf %92, %93 : vector<8x32xf32>
    %95 = arith.negf %94 : vector<8x32xf32>
    %96 = math.exp %95 : vector<8x32xf32>
    %cst_32 = arith.constant 1.000000e+00 : f32
    %97 = vector.broadcast %cst_32 : f32 to vector<8x32xf32>
    %98 = arith.addf %97, %96 : vector<8x32xf32>
    %99 = arith.divf %97, %98 : vector<8x32xf32>
    %100 = vector.extract_strided_slice %99 {offsets = [0, 0], sizes = [8, 16], strides = [1, 1]} : vector<8x32xf32> to vector<8x16xf32>
    %101 = vector.extract_strided_slice %99 {offsets = [0, 16], sizes = [8, 16], strides = [1, 1]} : vector<8x32xf32> to vector<8x16xf32>
    %102 = vector.extract_strided_slice %90 {offsets = [0, 32], sizes = [8, 16], strides = [1, 1]} : vector<8x48xf32> to vector<8x16xf32>
    %103 = vector.extract_strided_slice %91 {offsets = [0, 32], sizes = [8, 16], strides = [1, 1]} : vector<8x48xf32> to vector<8x16xf32>
    %104 = arith.addf %103, %42 : vector<8x16xf32>
    %105 = arith.mulf %100, %104 : vector<8x16xf32>
    %106 = arith.addf %102, %105 : vector<8x16xf32>
    %107 = math.tanh %106 : vector<8x16xf32>
    %cst_33 = arith.constant 1.000000e+00 : f32
    %108 = vector.broadcast %cst_33 : f32 to vector<8x16xf32>
    %109 = arith.subf %108, %101 : vector<8x16xf32>
    %110 = arith.mulf %109, %107 : vector<8x16xf32>
    %111 = arith.mulf %101, %89 : vector<8x16xf32>
    %112 = arith.addf %110, %111 : vector<8x16xf32>
    %113 = vector.extract_strided_slice %40 {offsets = [24, 0], sizes = [8, 48], strides = [1, 1]} : vector<64x48xf32> to vector<8x48xf32>
    %cst_34 = arith.constant dense<0.000000e+00> : vector<8x48xf32>
    %114 = tpu.matmul %112, %5, %cst_34 {dimension_numbers = #tpu.dot_dimension_numbers<[1], [0], [0], [1], [0, 0, 1, 1], [], []>} : vector<8x16xf32>, vector<16x48xf32>, vector<8x48xf32> -> vector<8x48xf32>
    %115 = vector.extract_strided_slice %113 {offsets = [0, 0], sizes = [8, 32], strides = [1, 1]} : vector<8x48xf32> to vector<8x32xf32>
    %116 = vector.extract_strided_slice %114 {offsets = [0, 0], sizes = [8, 32], strides = [1, 1]} : vector<8x48xf32> to vector<8x32xf32>
    %117 = arith.addf %115, %116 : vector<8x32xf32>
    %118 = arith.negf %117 : vector<8x32xf32>
    %119 = math.exp %118 : vector<8x32xf32>
    %cst_35 = arith.constant 1.000000e+00 : f32
    %120 = vector.broadcast %cst_35 : f32 to vector<8x32xf32>
    %121 = arith.addf %120, %119 : vector<8x32xf32>
    %122 = arith.divf %120, %121 : vector<8x32xf32>
    %123 = vector.extract_strided_slice %122 {offsets = [0, 0], sizes = [8, 16], strides = [1, 1]} : vector<8x32xf32> to vector<8x16xf32>
    %124 = vector.extract_strided_slice %122 {offsets = [0, 16], sizes = [8, 16], strides = [1, 1]} : vector<8x32xf32> to vector<8x16xf32>
    %125 = vector.extract_strided_slice %113 {offsets = [0, 32], sizes = [8, 16], strides = [1, 1]} : vector<8x48xf32> to vector<8x16xf32>
    %126 = vector.extract_strided_slice %114 {offsets = [0, 32], sizes = [8, 16], strides = [1, 1]} : vector<8x48xf32> to vector<8x16xf32>
    %127 = arith.addf %126, %42 : vector<8x16xf32>
    %128 = arith.mulf %123, %127 : vector<8x16xf32>
    %129 = arith.addf %125, %128 : vector<8x16xf32>
    %130 = math.tanh %129 : vector<8x16xf32>
    %cst_36 = arith.constant 1.000000e+00 : f32
    %131 = vector.broadcast %cst_36 : f32 to vector<8x16xf32>
    %132 = arith.subf %131, %124 : vector<8x16xf32>
    %133 = arith.mulf %132, %130 : vector<8x16xf32>
    %134 = arith.mulf %124, %112 : vector<8x16xf32>
    %135 = arith.addf %133, %134 : vector<8x16xf32>
    %136 = vector.extract_strided_slice %40 {offsets = [32, 0], sizes = [8, 48], strides = [1, 1]} : vector<64x48xf32> to vector<8x48xf32>
    %cst_37 = arith.constant dense<0.000000e+00> : vector<8x48xf32>
    %137 = tpu.matmul %135, %5, %cst_37 {dimension_numbers = #tpu.dot_dimension_numbers<[1], [0], [0], [1], [0, 0, 1, 1], [], []>} : vector<8x16xf32>, vector<16x48xf32>, vector<8x48xf32> -> vector<8x48xf32>
    %138 = vector.extract_strided_slice %136 {offsets = [0, 0], sizes = [8, 32], strides = [1, 1]} : vector<8x48xf32> to vector<8x32xf32>
    %139 = vector.extract_strided_slice %137 {offsets = [0, 0], sizes = [8, 32], strides = [1, 1]} : vector<8x48xf32> to vector<8x32xf32>
    %140 = arith.addf %138, %139 : vector<8x32xf32>
    %141 = arith.negf %140 : vector<8x32xf32>
    %142 = math.exp %141 : vector<8x32xf32>
    %cst_38 = arith.constant 1.000000e+00 : f32
    %143 = vector.broadcast %cst_38 : f32 to vector<8x32xf32>
    %144 = arith.addf %143, %142 : vector<8x32xf32>
    %145 = arith.divf %143, %144 : vector<8x32xf32>
    %146 = vector.extract_strided_slice %145 {offsets = [0, 0], sizes = [8, 16], strides = [1, 1]} : vector<8x32xf32> to vector<8x16xf32>
    %147 = vector.extract_strided_slice %145 {offsets = [0, 16], sizes = [8, 16], strides = [1, 1]} : vector<8x32xf32> to vector<8x16xf32>
    %148 = vector.extract_strided_slice %136 {offsets = [0, 32], sizes = [8, 16], strides = [1, 1]} : vector<8x48xf32> to vector<8x16xf32>
    %149 = vector.extract_strided_slice %137 {offsets = [0, 32], sizes = [8, 16], strides = [1, 1]} : vector<8x48xf32> to vector<8x16xf32>
    %150 = arith.addf %149, %42 : vector<8x16xf32>
    %151 = arith.mulf %146, %150 : vector<8x16xf32>
    %152 = arith.addf %148, %151 : vector<8x16xf32>
    %153 = math.tanh %152 : vector<8x16xf32>
    %cst_39 = arith.constant 1.000000e+00 : f32
    %154 = vector.broadcast %cst_39 : f32 to vector<8x16xf32>
    %155 = arith.subf %154, %147 : vector<8x16xf32>
    %156 = arith.mulf %155, %153 : vector<8x16xf32>
    %157 = arith.mulf %147, %135 : vector<8x16xf32>
    %158 = arith.addf %156, %157 : vector<8x16xf32>
    %159 = vector.extract_strided_slice %40 {offsets = [40, 0], sizes = [8, 48], strides = [1, 1]} : vector<64x48xf32> to vector<8x48xf32>
    %cst_40 = arith.constant dense<0.000000e+00> : vector<8x48xf32>
    %160 = tpu.matmul %158, %5, %cst_40 {dimension_numbers = #tpu.dot_dimension_numbers<[1], [0], [0], [1], [0, 0, 1, 1], [], []>} : vector<8x16xf32>, vector<16x48xf32>, vector<8x48xf32> -> vector<8x48xf32>
    %161 = vector.extract_strided_slice %159 {offsets = [0, 0], sizes = [8, 32], strides = [1, 1]} : vector<8x48xf32> to vector<8x32xf32>
    %162 = vector.extract_strided_slice %160 {offsets = [0, 0], sizes = [8, 32], strides = [1, 1]} : vector<8x48xf32> to vector<8x32xf32>
    %163 = arith.addf %161, %162 : vector<8x32xf32>
    %164 = arith.negf %163 : vector<8x32xf32>
    %165 = math.exp %164 : vector<8x32xf32>
    %cst_41 = arith.constant 1.000000e+00 : f32
    %166 = vector.broadcast %cst_41 : f32 to vector<8x32xf32>
    %167 = arith.addf %166, %165 : vector<8x32xf32>
    %168 = arith.divf %166, %167 : vector<8x32xf32>
    %169 = vector.extract_strided_slice %168 {offsets = [0, 0], sizes = [8, 16], strides = [1, 1]} : vector<8x32xf32> to vector<8x16xf32>
    %170 = vector.extract_strided_slice %168 {offsets = [0, 16], sizes = [8, 16], strides = [1, 1]} : vector<8x32xf32> to vector<8x16xf32>
    %171 = vector.extract_strided_slice %159 {offsets = [0, 32], sizes = [8, 16], strides = [1, 1]} : vector<8x48xf32> to vector<8x16xf32>
    %172 = vector.extract_strided_slice %160 {offsets = [0, 32], sizes = [8, 16], strides = [1, 1]} : vector<8x48xf32> to vector<8x16xf32>
    %173 = arith.addf %172, %42 : vector<8x16xf32>
    %174 = arith.mulf %169, %173 : vector<8x16xf32>
    %175 = arith.addf %171, %174 : vector<8x16xf32>
    %176 = math.tanh %175 : vector<8x16xf32>
    %cst_42 = arith.constant 1.000000e+00 : f32
    %177 = vector.broadcast %cst_42 : f32 to vector<8x16xf32>
    %178 = arith.subf %177, %170 : vector<8x16xf32>
    %179 = arith.mulf %178, %176 : vector<8x16xf32>
    %180 = arith.mulf %170, %158 : vector<8x16xf32>
    %181 = arith.addf %179, %180 : vector<8x16xf32>
    %182 = vector.extract_strided_slice %40 {offsets = [48, 0], sizes = [8, 48], strides = [1, 1]} : vector<64x48xf32> to vector<8x48xf32>
    %cst_43 = arith.constant dense<0.000000e+00> : vector<8x48xf32>
    %183 = tpu.matmul %181, %5, %cst_43 {dimension_numbers = #tpu.dot_dimension_numbers<[1], [0], [0], [1], [0, 0, 1, 1], [], []>} : vector<8x16xf32>, vector<16x48xf32>, vector<8x48xf32> -> vector<8x48xf32>
    %184 = vector.extract_strided_slice %182 {offsets = [0, 0], sizes = [8, 32], strides = [1, 1]} : vector<8x48xf32> to vector<8x32xf32>
    %185 = vector.extract_strided_slice %183 {offsets = [0, 0], sizes = [8, 32], strides = [1, 1]} : vector<8x48xf32> to vector<8x32xf32>
    %186 = arith.addf %184, %185 : vector<8x32xf32>
    %187 = arith.negf %186 : vector<8x32xf32>
    %188 = math.exp %187 : vector<8x32xf32>
    %cst_44 = arith.constant 1.000000e+00 : f32
    %189 = vector.broadcast %cst_44 : f32 to vector<8x32xf32>
    %190 = arith.addf %189, %188 : vector<8x32xf32>
    %191 = arith.divf %189, %190 : vector<8x32xf32>
    %192 = vector.extract_strided_slice %191 {offsets = [0, 0], sizes = [8, 16], strides = [1, 1]} : vector<8x32xf32> to vector<8x16xf32>
    %193 = vector.extract_strided_slice %191 {offsets = [0, 16], sizes = [8, 16], strides = [1, 1]} : vector<8x32xf32> to vector<8x16xf32>
    %194 = vector.extract_strided_slice %182 {offsets = [0, 32], sizes = [8, 16], strides = [1, 1]} : vector<8x48xf32> to vector<8x16xf32>
    %195 = vector.extract_strided_slice %183 {offsets = [0, 32], sizes = [8, 16], strides = [1, 1]} : vector<8x48xf32> to vector<8x16xf32>
    %196 = arith.addf %195, %42 : vector<8x16xf32>
    %197 = arith.mulf %192, %196 : vector<8x16xf32>
    %198 = arith.addf %194, %197 : vector<8x16xf32>
    %199 = math.tanh %198 : vector<8x16xf32>
    %cst_45 = arith.constant 1.000000e+00 : f32
    %200 = vector.broadcast %cst_45 : f32 to vector<8x16xf32>
    %201 = arith.subf %200, %193 : vector<8x16xf32>
    %202 = arith.mulf %201, %199 : vector<8x16xf32>
    %203 = arith.mulf %193, %181 : vector<8x16xf32>
    %204 = arith.addf %202, %203 : vector<8x16xf32>
    %205 = vector.extract_strided_slice %40 {offsets = [56, 0], sizes = [8, 48], strides = [1, 1]} : vector<64x48xf32> to vector<8x48xf32>
    %cst_46 = arith.constant dense<0.000000e+00> : vector<8x48xf32>
    %206 = tpu.matmul %204, %5, %cst_46 {dimension_numbers = #tpu.dot_dimension_numbers<[1], [0], [0], [1], [0, 0, 1, 1], [], []>} : vector<8x16xf32>, vector<16x48xf32>, vector<8x48xf32> -> vector<8x48xf32>
    %207 = vector.extract_strided_slice %205 {offsets = [0, 0], sizes = [8, 32], strides = [1, 1]} : vector<8x48xf32> to vector<8x32xf32>
    %208 = vector.extract_strided_slice %206 {offsets = [0, 0], sizes = [8, 32], strides = [1, 1]} : vector<8x48xf32> to vector<8x32xf32>
    %209 = arith.addf %207, %208 : vector<8x32xf32>
    %210 = arith.negf %209 : vector<8x32xf32>
    %211 = math.exp %210 : vector<8x32xf32>
    %cst_47 = arith.constant 1.000000e+00 : f32
    %212 = vector.broadcast %cst_47 : f32 to vector<8x32xf32>
    %213 = arith.addf %212, %211 : vector<8x32xf32>
    %214 = arith.divf %212, %213 : vector<8x32xf32>
    %215 = vector.extract_strided_slice %214 {offsets = [0, 0], sizes = [8, 16], strides = [1, 1]} : vector<8x32xf32> to vector<8x16xf32>
    %216 = vector.extract_strided_slice %214 {offsets = [0, 16], sizes = [8, 16], strides = [1, 1]} : vector<8x32xf32> to vector<8x16xf32>
    %217 = vector.extract_strided_slice %205 {offsets = [0, 32], sizes = [8, 16], strides = [1, 1]} : vector<8x48xf32> to vector<8x16xf32>
    %218 = vector.extract_strided_slice %206 {offsets = [0, 32], sizes = [8, 16], strides = [1, 1]} : vector<8x48xf32> to vector<8x16xf32>
    %219 = arith.addf %218, %42 : vector<8x16xf32>
    %220 = arith.mulf %215, %219 : vector<8x16xf32>
    %221 = arith.addf %217, %220 : vector<8x16xf32>
    %222 = math.tanh %221 : vector<8x16xf32>
    %cst_48 = arith.constant 1.000000e+00 : f32
    %223 = vector.broadcast %cst_48 : f32 to vector<8x16xf32>
    %224 = arith.subf %223, %216 : vector<8x16xf32>
    %225 = arith.mulf %224, %222 : vector<8x16xf32>
    %226 = arith.mulf %216, %204 : vector<8x16xf32>
    %227 = arith.addf %225, %226 : vector<8x16xf32>
    %228 = tpu.concatenate %66, %89, %112, %135, %158, %181, %204, %227 in 0 : vector<8x16xf32>, vector<8x16xf32>, vector<8x16xf32>, vector<8x16xf32>, vector<8x16xf32>, vector<8x16xf32>, vector<8x16xf32>, vector<8x16xf32> -> vector<64x16xf32>
    %229 = arith.mulf %37, %37 : vector<64x16xf32>
    %cst_49 = arith.constant dense<0.000000e+00> : vector<64xf32>
    %230 = vector.multi_reduction <add>, %229, %cst_49 [1] : vector<64x16xf32> to vector<64xf32>
    %231 = vector.shape_cast %230 : vector<64xf32> to vector<64x1xf32>
    %232 = arith.mulf %228, %228 : vector<64x16xf32>
    %cst_50 = arith.constant dense<0.000000e+00> : vector<64xf32>
    %233 = vector.multi_reduction <add>, %232, %cst_50 [1] : vector<64x16xf32> to vector<64xf32>
    %234 = vector.shape_cast %233 : vector<64xf32> to vector<64x1xf32>
    %235 = arith.addf %231, %234 : vector<64x1xf32>
    %cst_51 = arith.constant dense<0.000000e+00> : vector<64x32xf32>
    %236 = tpu.matmul %37, %6, %cst_51 {dimension_numbers = #tpu.dot_dimension_numbers<[1], [0], [0], [1], [0, 0, 1, 1], [], []>} : vector<64x16xf32>, vector<16x32xf32>, vector<64x32xf32> -> vector<64x32xf32>
    %cst_52 = arith.constant dense<0.000000e+00> : vector<64x32xf32>
    %237 = tpu.matmul %228, %7, %cst_52 {dimension_numbers = #tpu.dot_dimension_numbers<[1], [0], [0], [1], [0, 0, 1, 1], [], []>} : vector<64x16xf32>, vector<16x32xf32>, vector<64x32xf32> -> vector<64x32xf32>
    %238 = arith.addf %236, %237 : vector<64x32xf32>
    %239 = vector.broadcast %235 : vector<64x1xf32> to vector<64x32xf32>
    %240 = vector.broadcast %14 : vector<1x32xf32> to vector<64x32xf32>
    %241 = arith.addf %239, %240 : vector<64x32xf32>
    %cst_53 = arith.constant 2.000000e+00 : f32
    %242 = vector.broadcast %cst_53 : f32 to vector<64x32xf32>
    %243 = arith.mulf %242, %238 : vector<64x32xf32>
    %244 = arith.subf %241, %243 : vector<64x32xf32>
    %cst_54 = arith.constant 0.000000e+00 : f32
    %245 = vector.broadcast %cst_54 : f32 to vector<64x32xf32>
    %246 = arith.maximumf %244, %245 : vector<64x32xf32>
    %247 = vector.broadcast %0 : f32 to vector<64x32xf32>
    %248 = arith.mulf %247, %246 : vector<64x32xf32>
    %249 = math.exp %248 : vector<64x32xf32>
    %cst_55 = arith.constant dense<0.000000e+00> : vector<8x32xf32>
    %250 = tpu.matmul %9, %249, %cst_55 {dimension_numbers = #tpu.dot_dimension_numbers<[1], [0], [0], [1], [0, 0, 1, 1], [], []>} : vector<8x64xf32>, vector<64x32xf32>, vector<8x32xf32> -> vector<8x32xf32>
    %cst_56 = arith.constant dense<0.000000e+00> : vector<8x1xf32>
    %251 = tpu.matmul %250, %8, %cst_56 {dimension_numbers = #tpu.dot_dimension_numbers<[1], [0], [0], [1], [0, 0, 1, 1], [], []>} : vector<8x32xf32>, vector<32x1xf32>, vector<8x1xf32> -> vector<8x1xf32>
    %252 = vector.broadcast %1 : f32 to vector<8x1xf32>
    %253 = arith.addf %251, %252 : vector<8x1xf32>
    %254 = vector.shape_cast %253 : vector<8x1xf32> to vector<8x1xf32>
    %255 = vector.broadcast %254 : vector<8x1xf32> to vector<8x128xf32>
    %c0_57 = arith.constant 0 : index
    %c0_58 = arith.constant 0 : index
    %256 = vector.load %arg3[%c0_57, %c0_58] : memref<8x128xf32, #tpu.memory_space<vmem>>, vector<8x128xf32>
    tpu.vector_store %arg3[%c0_57, %c0_58], %255 {strides = array<i32>} : memref<8x128xf32, #tpu.memory_space<vmem>>, vector<8x128xf32>,
    return
  }
}

</mosaic_0001>

<bundles_post_ra>
// kernel: tpu_custom_call.1
= control target key start
LH: loop header
LB: loop body
LE: loop exit
PB: predicated region body
PF: predicated region fallthrough
CT: control target
= control target key end

     0   :  { %8 = vsyncpa [#allocation3], 0  ;;  %s1817_s0 = inlined_call_operand.vmem [shape: f32[64,16], index: 0, kind: input, shape index: {}]   ;;  %s1818_s1 = inlined_call_operand.hbm [shape: f32[192,128], index: 1, kind: input, shape index: {}]   ;;  %s1819_s2 = inlined_call_operand.vmem [shape: f32[2], index: 2, kind: input, shape index: {}]   ;;  %s1820_s3 = inlined_call_operand.hbm [shape: f32[8,128], index: 3, kind: output, shape index: {}]  }
   0x1   :  { %9 = vsyncpa [#allocation5], 0 }
   0x2   :  { %10 = vsyncpa [#allocation4], 0  ;;  %s17_s14 = sshll.u32 %s1818_s1, 4  ;;  %s1475_s15 = smov [#allocation2]   ;;  %s18_s14 = int_to_ptr.hbm [resolvable:$true] %s17_s14 }
   0x3   :  { %s19_s16 = sshll.u32 %s1475_s15, 4  ;;  %s31_s19 = sshll.u32 %s1819_s2, 4  ;;  %s20_s16 = int_to_ptr.vmem [resolvable:$true] %s19_s16  ;;  %s32_s19 = int_to_ptr.vmem [resolvable:$true] %s31_s19 }
   0x4   :  { %s1476_s20 = smov 128   ;;  %s1477_s21 = smov 8  }
   0x5   :  { %25 = dma.hbm_to_vmem [thread:$0]  %s18_s14, 3072, %s20_s16, [#allocation3], %s1476_s20, %s1476_s20, %s1477_s21  }
   0x6   :  { %s1478_s22 = smov [#allocation6]  }
   0x7   :  { %34 = dma.vmem_to_smem %s32_s19, 16, %s1478_s22, [#allocation5]  }
   0x8   :  { %1469 = dma.done.wait [#allocation3], 3072  }
   0x9   :  { %1470 = vsyncadd [#allocation3], 4294964224 }
   0xa   :  { %1471 = dma.done.wait [#allocation5], 16  }
   0xb   :  { %1472 = vsyncadd [#allocation5], 4294967280 }
   0xc   :  { %43 = sfence }
   0xd   :  { %v47_v0 = vld [vmem:[#allocation2 + $0x8] sm:$0xff]  ;;  %v46_v1 = vld [vmem:[#allocation2] sm:$0xff]  ;;  %vm79_vm0 = vcmask 130048   ;;  %v76_v5 = vld [vmem:[%s1817_s0 + $0x30] sm:$0xff]  ;;  %vm194_vm1 = vcmask 261120   ;;  %v1479_v48 = vmov 0.0  }
   0xe   :  { %118 = vmatpush.msra.mxu0 %v47_v0  ;;  %v70_v2 = vld [vmem:[%s1817_s0] sm:$0xff]  ;;  %1292 = vmatpush.msra.mxu3 %v47_v0  ;;  %v75_v3 = vld [vmem:[%s1817_s0 + $0x28] sm:$0xff]  ;;  %v72_v6 = vld [vmem:[%s1817_s0 + $0x10] sm:$0xff]  ;;  %s1481_s10 = smov 96   ;;  %s1482_s11 = smov 112  }
   0xf   :  { %v71_v4 = vld [vmem:[%s1817_s0 + $0x8] sm:$0xff]  ;;  %v77_v7 = vld [vmem:[%s1817_s0 + $0x38] sm:$0xff]  ;;  %v74_v9 = vld [vmem:[%s1817_s0 + $0x20] sm:$0xff]  ;;  %s44_s12 = sld [smem:[#allocation6]]  ;;  %s1484_s14 = smov [#allocation7]  }
  0x10   :  { %119 = vmatpush.msra.mxu0 %v46_v1  ;;  %1293 = vmatpush.msra.mxu3 %v46_v1  ;;  %v73_v8 = vld [vmem:[%s1817_s0 + $0x18] sm:$0xff]  ;;  %v51_v10 = vld [vmem:[#allocation2 + $0x28] sm:$0xff]  ;;  %v50_v11 = vld [vmem:[#allocation2 + $0x20] sm:$0xff]  ;;  %s1480_s0 = smov 32   ;;  %s1218_s13 = sld [smem:[#allocation6 + $0x1]] }
  0x11   :  { %1219 = vmatmul.msk.f32.vlgmr.msra.gmra.mxu0 %vm79_vm0, %v70_v2  ;;  %1224 = vmatmul.msk.f32.vlgmr.msra.gmra.mxu3 %vm79_vm0, %v75_v3  ;;  %v49_v12 = vld [vmem:[#allocation2 + $0x18] sm:$0xff]  ;;  %v48_v13 = vld [vmem:[#allocation2 + $0x10] sm:$0xff]  ;;  %v1549_v28 = vld [vmem:[#allocation2 + $0x48] sm:$0xff]  ;;  %s1205_s15 = sshll.u32 %s1484_s14, 4  ;;  %s1207_s18 = sshll.u32 %s1820_s3, 4  ;;  %s1206_s15 = int_to_ptr.vmem [resolvable:$true] %s1205_s15  ;;  %s1208_s18 = int_to_ptr.hbm [resolvable:$true] %s1207_s18 }
  0x12   :  { %231 = vmatpush.msra.mxu1 %v51_v10  ;;  %v1543_v14 = vld [vmem:[#allocation2 + $0x98] ss:$0 sm:$0xff]  ;;  %392 = vmatpush.msrb.mxu3 %v1549_v28  ;;  %v1554_v37 = vld [vmem:[#allocation2 + $0x40] sm:$0xff]  ;;  %v1309_v57 = vld [vmem:[#allocation2 + $0xb0] ss:$0 sm:$0xff] }
  0x13   :  { %v53_v58 = vld [vmem:[#allocation2 + $0x38] sm:$0xff]  ;;  %v52_v59 = vld [vmem:[#allocation2 + $0x30] sm:$0xff]  ;;  %419 = vrot.lane.b32.xlu0 %v1309_v57, %s1480_s0 }
  0x14   :  { %232 = vmatpush.msra.mxu1 %v50_v11  ;;  %393 = vmatpush.msrb.mxu3 %v1554_v37 }
  0x15   :  { %1294 = vmatpush.msra.mxu2 %v53_v58 }
  0x16   :  { %233 = vmatpush.msra.mxu1 %v49_v12  ;;  %461 = vmatpush.msra.mxu3 %v1549_v28 }
  0x17   :  { %1295 = vmatpush.msra.mxu2 %v52_v59 }
  0x18   :  { %234 = vmatpush.msra.mxu1 %v48_v13  ;;  %462 = vmatpush.msra.mxu3 %v1554_v37  ;;  %v1572_v13 = vld [vmem:[#allocation2 + $0xa0] ss:$0 sm:$0xff] }
  0x19   :  { %1220 = vmatmul.msk.f32.gmra.mxu0 %vm79_vm0, %v71_v4  ;;  %1225 = vmatmul.msk.f32.gmra.mxu3 %vm79_vm0, %v76_v5 }
  0x1a   :  { %347 = vmatpush.msrb.mxu1 %v53_v58 }
  0x1c   :  { %348 = vmatpush.msrb.mxu1 %v52_v59 }
  0x21   :  { %1221 = vmatmul.msk.f32.gmra.mxu0 %vm79_vm0, %v72_v6  ;;  %1226 = vmatmul.msk.f32.gmra.mxu3 %vm79_vm0, %v77_v7 }
  0x29   :  { %1222 = vmatmul.msk.f32.gmra.mxu0 %vm79_vm0, %v73_v8  ;;  %394 = vmatmul.f32.vlgmr.msrb.gmra.mxu3 %v1479_v48 }
  0x2a   :  { %526 = vmatpush.msrb.mxu3 %v1549_v28 }
  0x2c   :  { %527 = vmatpush.msrb.mxu3 %v1554_v37 }
  0x31   :  { %1223 = vmatmul.msk.f32.gmra.mxu0 %vm79_vm0, %v74_v9 }
  0x8e   :  { %v121_v15 = vpop.f32.mrf.mxu0 }
  0x8f   :  { %v122_v16 = vadd.f32 %v1543_v14, %v121_v15 }
  0x91   :  { %v153_v17 = vmin.f32 %v122_v16, 0.0  ;;  %vm145_vm2 = vcmp.gt.f32.partialorder %v122_v16, 0.0 }
  0x93   :  { %v161_v18 = vmul.f32 1.442695, %v153_v17 }
  0x94   :  { %v136_v33 = vpop.f32.mrf.mxu3 }
  0x95   :  { %1313 = vpow2.f32 %v161_v18  ;;  %v137_v41 = vadd.f32 %v1543_v14, %v136_v33 }
  0x96   :  { %v124_v19 = vpop.f32.mrf.mxu0 }
  0x97   :  { %v125_v20 = vadd.f32 %v1543_v14, %v124_v19  ;;  %v158_v47 = vmin.f32 %v137_v41, 0.0  ;;  %vm150_vm7 = vcmp.gt.f32.partialorder %v137_v41, 0.0 }
  0x99   :  { %v154_v21 = vmin.f32 %v125_v20, 0.0  ;;  %vm146_vm3 = vcmp.gt.f32.partialorder %v125_v20, 0.0  ;;  %v171_v52 = vmul.f32 1.442695, %v158_v47 }
  0x9b   :  { %v1314_v22 = vpop.eup %1313  ;;  %v163_v23 = vmul.f32 1.442695, %v154_v21 }
  0x9c   :  { %v1227_v24 = vadd.f32 -1.0, %v1314_v22  ;;  %v139_v45 = vpop.f32.mrf.mxu3 }
  0x9d   :  { %1315 = vpow2.f32 %v163_v23  ;;  %v140_v53 = vadd.f32 %v1543_v14, %v139_v45 }
  0x9e   :  { %v127_v25 = vpop.f32.mrf.mxu0  ;;  %v185_v26 = vsel %vm145_vm2, %v122_v16, %v1227_v24 }
  0x9f   :  { %v128_v27 = vadd.f32 %v1543_v14, %v127_v25  ;;  %1235 = vmatmul.msk.f32.vlgmr.msra.gmra.mxu1 %vm194_vm1, %v185_v26  ;;  %v159_v56 = vmin.f32 %v140_v53, 0.0  ;;  %vm151_vm8 = vcmp.gt.f32.partialorder %v140_v53, 0.0 }
  0xa1   :  { %v155_v29 = vmin.f32 %v128_v27, 0.0  ;;  %vm147_vm4 = vcmp.gt.f32.partialorder %v128_v27, 0.0  ;;  %v173_v62 = vmul.f32 1.442695, %v159_v56 }
  0xa3   :  { %v1316_v30 = vpop.eup %1315  ;;  %v165_v31 = vmul.f32 1.442695, %v155_v29 }
  0xa4   :  { %v1228_v32 = vadd.f32 -1.0, %v1316_v30  ;;  %v142_v60 = vpop.f32.mrf.mxu3 }
  0xa5   :  { %1317 = vpow2.f32 %v165_v31  ;;  %v143_v63 = vadd.f32 %v1543_v14, %v142_v60 }
  0xa6   :  { %v130_v34 = vpop.f32.mrf.mxu0  ;;  %v186_v35 = vsel %vm146_vm3, %v125_v20, %v1228_v32 }
  0xa7   :  { %v131_v36 = vadd.f32 %v1543_v14, %v130_v34  ;;  %1236 = vmatmul.msk.f32.gmra.mxu1 %vm194_vm1, %v186_v35  ;;  %v160_v3 = vmin.f32 %v143_v63, 0.0  ;;  %vm152_vm9 = vcmp.gt.f32.partialorder %v143_v63, 0.0 }
  0xa9   :  { %v156_v38 = vmin.f32 %v131_v36, 0.0  ;;  %vm148_vm5 = vcmp.gt.f32.partialorder %v131_v36, 0.0  ;;  %v175_v5 = vmul.f32 1.442695, %v160_v3 }
  0xab   :  { %v1318_v39 = vpop.eup %1317  ;;  %v167_v40 = vmul.f32 1.442695, %v156_v38 }
  0xac   :  { %v1229_v42 = vadd.f32 -1.0, %v1318_v39  ;;  %v1583_v29 = vpop.f32.mrf.mxu3 }
  0xad   :  { %1319 = vpow2.f32 %v167_v40 }
  0xae   :  { %v133_v43 = vpop.f32.mrf.mxu0  ;;  %v187_v44 = vsel %vm147_vm4, %v128_v27, %v1229_v42  ;;  %v1581_v27 = vpop.permute.xlu0 %419 }
  0xaf   :  { %v134_v46 = vadd.f32 %v1543_v14, %v133_v43  ;;  %1237 = vmatmul.msk.f32.gmra.mxu1 %vm194_vm1, %v187_v44  ;;  %v422_v30 = vadd.f32 %v1581_v27, %v1583_v29 }
  0xb1   :  { %v157_v49 = vmin.f32 %v134_v46, 0.0  ;;  %vm149_vm6 = vcmp.gt.f32.partialorder %v134_v46, 0.0  ;;  %424 = vrot.lane.b32.xlu0 %v422_v30, %s1481_s10 }
  0xb3   :  { %v1320_v50 = vpop.eup %1319  ;;  %v169_v51 = vmul.f32 1.442695, %v157_v49  ;;  %v57_v49 = vld [vmem:[#allocation2 + $0x58] sm:$0xff] }
  0xb4   :  { %v1230_v54 = vadd.f32 -1.0, %v1320_v50  ;;  %v56_v50 = vld [vmem:[#allocation2 + $0x50] sm:$0xff]  ;;  %1061 = vmatpush.msrb.mxu2 %v57_v49 }
  0xb5   :  { %1321 = vpow2.f32 %v169_v51 }
  0xb6   :  { %v188_v55 = vsel %vm148_vm5, %v131_v36, %v1230_v54  ;;  %1323 = vpow2.f32 %v171_v52  ;;  %1062 = vmatpush.msrb.mxu2 %v56_v50 }
  0xb7   :  { %1238 = vmatmul.msk.f32.gmra.mxu1 %vm194_vm1, %v188_v55  ;;  %1325 = vpow2.f32 %v173_v62 }
  0xb8   :  { %1327 = vpow2.f32 %v175_v5 }
  0xbb   :  { %v1322_v61 = vpop.eup %1321 }
  0xbc   :  { %v1231_v0 = vadd.f32 -1.0, %v1322_v61  ;;  %v1324_v1 = vpop.eup %1323 }
  0xbd   :  { %v1232_v4 = vadd.f32 -1.0, %v1324_v1  ;;  %v1326_v7 = vpop.eup %1325 }
  0xbe   :  { %v189_v2 = vsel %vm149_vm6, %v134_v46, %v1231_v0  ;;  %v1233_v8 = vadd.f32 -1.0, %v1326_v7  ;;  %v1328_v10 = vpop.eup %1327 }
  0xbf   :  { %1239 = vmatmul.msk.f32.gmra.mxu1 %vm194_vm1, %v189_v2  ;;  %v190_v6 = vsel %vm150_vm7, %v137_v41, %v1232_v4  ;;  %v1234_v11 = vadd.f32 -1.0, %v1328_v10 }
  0xc0   :  { %v191_v9 = vsel %vm151_vm8, %v140_v53, %v1233_v8 }
  0xc1   :  { %v192_v12 = vsel %vm152_vm9, %v143_v63, %v1234_v11 }
  0xc7   :  { %1240 = vmatmul.msk.f32.gmra.mxu1 %vm194_vm1, %v190_v6 }
  0xcf   :  { %1241 = vmatmul.msk.f32.gmra.mxu1 %vm194_vm1, %v191_v9 }
  0xd7   :  { %1242 = vmatmul.msk.f32.gmra.mxu1 %vm194_vm1, %v192_v12 }
 0x11c   :  { %v236_v14 = vpop.f32.mrf.mxu1 }
 0x11d   :  { %v237_v15 = vadd.f32 %v1572_v13, %v236_v14 }
 0x11f   :  { %v268_v16 = vmin.f32 %v237_v15, 0.0  ;;  %vm260_vm10 = vcmp.gt.f32.partialorder %v237_v15, 0.0 }
 0x121   :  { %v276_v17 = vmul.f32 1.442695, %v268_v16 }
 0x123   :  { %1329 = vpow2.f32 %v276_v17 }
 0x124   :  { %v239_v18 = vpop.f32.mrf.mxu1 }
 0x125   :  { %v240_v23 = vadd.f32 %v1572_v13, %v239_v18 }
 0x127   :  { %v269_v24 = vmin.f32 %v240_v23, 0.0  ;;  %vm261_vm12 = vcmp.gt.f32.partialorder %v240_v23, 0.0 }
 0x129   :  { %v1330_v19 = vpop.eup %1329  ;;  %v278_v32 = vmul.f32 1.442695, %v269_v24 }
 0x12a   :  { %v1243_v20 = vadd.f32 -1.0, %v1330_v19 }
 0x12c   :  { %v242_v21 = vpop.f32.mrf.mxu1  ;;  %v1575_v22 = vsel %vm260_vm10, %v237_v15, %v1243_v20 }
 0x12d   :  { %1251 = vmatmul.msk.f32.vlgmr.msrb.gmra.mxu1 %vm79_vm0, %v1575_v22  ;;  %v243_v33 = vadd.f32 %v1572_v13, %v242_v21 }
 0x12f   :  { %v270_v35 = vmin.f32 %v243_v33, 0.0  ;;  %vm262_vm14 = vcmp.gt.f32.partialorder %v243_v33, 0.0 }
 0x131   :  { %v280_v40 = vmul.f32 1.442695, %v270_v35 }
 0x134   :  { %v245_v25 = vpop.f32.mrf.mxu1 }
 0x135   :  { %v246_v26 = vadd.f32 %v1572_v13, %v245_v25 }
 0x137   :  { %v271_v31 = vmin.f32 %v246_v26, 0.0  ;;  %vm263_vm11 = vcmp.gt.f32.partialorder %v246_v26, 0.0 }
 0x139   :  { %v282_v34 = vmul.f32 1.442695, %v271_v31  ;;  %v425_v31 = vpop.permute.xlu0 %424 }
 0x13b   :  { %1331 = vpow2.f32 %v282_v34 }
 0x13c   :  { %1333 = vpow2.f32 %v278_v32  ;;  %v248_v36 = vpop.f32.mrf.mxu1 }
 0x13d   :  { %v249_v38 = vadd.f32 %v1572_v13, %v248_v36 }
 0x13f   :  { %v272_v39 = vmin.f32 %v249_v38, 0.0  ;;  %vm264_vm13 = vcmp.gt.f32.partialorder %v249_v38, 0.0 }
 0x141   :  { %v1332_v41 = vpop.eup %1331  ;;  %v284_v42 = vmul.f32 1.442695, %v272_v39  ;;  %v59_v39 = vld [vmem:[#allocation2 + $0x68] sm:$0xff] }
 0x142   :  { %v1334_v43 = vpop.eup %1333  ;;  %v1246_v44 = vadd.f32 -1.0, %v1332_v41  ;;  %1020 = vmatpush.msrb.mxu0 %v59_v39 }
 0x143   :  { %1335 = vpow2.f32 %v284_v42  ;;  %v1244_v48 = vadd.f32 -1.0, %v1334_v43 }
 0x144   :  { %1337 = vpow2.f32 %v280_v40  ;;  %v251_v45 = vpop.f32.mrf.mxu1  ;;  %v1590_v46 = vsel %vm263_vm11, %v246_v26, %v1246_v44  ;;  %v58_v40 = vld [vmem:[#allocation2 + $0x60] sm:$0xff] }
 0x145   :  { %v252_v47 = vadd.f32 %v1572_v13, %v251_v45  ;;  %1254 = vmatmul.msk.f32.vlgmr.msra.gmra.mxu2 %vm79_vm0, %v1590_v46  ;;  %v1595_v52 = vsel %vm261_vm12, %v240_v23, %v1244_v48  ;;  %1021 = vmatpush.msrb.mxu0 %v58_v40 }
 0x146   :  { %1252 = vmatmul.msk.f32.gmra.mxu1 %vm79_vm0, %v1595_v52 }
 0x147   :  { %v273_v51 = vmin.f32 %v252_v47, 0.0  ;;  %vm265_vm15 = vcmp.gt.f32.partialorder %v252_v47, 0.0 }
 0x149   :  { %v1336_v53 = vpop.eup %1335  ;;  %v286_v54 = vmul.f32 1.442695, %v273_v51 }
 0x14a   :  { %v1338_v55 = vpop.eup %1337  ;;  %v1247_v56 = vadd.f32 -1.0, %v1336_v53 }
 0x14b   :  { %1339 = vpow2.f32 %v286_v54  ;;  %v1245_v60 = vadd.f32 -1.0, %v1338_v55 }
 0x14c   :  { %v254_v57 = vpop.f32.mrf.mxu1  ;;  %v1599_v58 = vsel %vm264_vm13, %v249_v38, %v1247_v56 }
 0x14d   :  { %v255_v59 = vadd.f32 %v1572_v13, %v254_v57  ;;  %1255 = vmatmul.msk.f32.gmra.mxu2 %vm79_vm0, %v1599_v58  ;;  %v1604_v62 = vsel %vm262_vm14, %v243_v33, %v1245_v60 }
 0x14e   :  { %1253 = vmatmul.msk.f32.gmra.mxu1 %vm79_vm0, %v1604_v62 }
 0x14f   :  { %v274_v61 = vmin.f32 %v255_v59, 0.0  ;;  %vm266_vm2 = vcmp.gt.f32.partialorder %v255_v59, 0.0 }
 0x151   :  { %v1340_v63 = vpop.eup %1339  ;;  %v288_v0 = vmul.f32 1.442695, %v274_v61 }
 0x152   :  { %v1248_v1 = vadd.f32 -1.0, %v1340_v63 }
 0x153   :  { %1341 = vpow2.f32 %v288_v0 }
 0x154   :  { %v257_v2 = vpop.f32.mrf.mxu1  ;;  %v1608_v3 = vsel %vm265_vm15, %v252_v47, %v1248_v1 }
 0x155   :  { %v258_v4 = vadd.f32 %v1572_v13, %v257_v2  ;;  %1256 = vmatmul.msk.f32.gmra.mxu2 %vm79_vm0, %v1608_v3  ;;  %v1637_v13 = vld [vmem:[#allocation2 + $0xa8] ss:$0 sm:$0xff] }
 0x157   :  { %v275_v5 = vmin.f32 %v258_v4, 0.0  ;;  %vm267_vm3 = vcmp.gt.f32.partialorder %v258_v4, 0.0 }
 0x159   :  { %v1342_v6 = vpop.eup %1341  ;;  %v290_v7 = vmul.f32 1.442695, %v275_v5 }
 0x15a   :  { %v1249_v8 = vadd.f32 -1.0, %v1342_v6 }
 0x15b   :  { %1343 = vpow2.f32 %v290_v7 }
 0x15c   :  { %v1613_v9 = vsel %vm266_vm2, %v255_v59, %v1249_v8 }
 0x15d   :  { %1257 = vmatmul.msk.f32.gmra.mxu2 %vm79_vm0, %v1613_v9 }
 0x161   :  { %v1344_v10 = vpop.eup %1343 }
 0x162   :  { %v1250_v11 = vadd.f32 -1.0, %v1344_v10 }
 0x164   :  { %v1617_v12 = vsel %vm267_vm3, %v258_v4, %v1250_v11 }
 0x165   :  { %1258 = vmatmul.msk.f32.gmra.mxu2 %vm79_vm0, %v1617_v12 }
 0x16d   :  { %1282 = vmatmul.msk.f32.vlgmr.msrb.gmra.mxu2 %vm79_vm0, %v1575_v22 }
 0x175   :  { %1283 = vmatmul.msk.f32.gmra.mxu2 %vm79_vm0, %v1595_v52 }
 0x17d   :  { %1284 = vmatmul.msk.f32.gmra.mxu2 %vm79_vm0, %v1604_v62 }
 0x185   :  { %1285 = vmatmul.msk.f32.gmra.mxu2 %vm79_vm0, %v1590_v46 }
 0x18d   :  { %1286 = vmatmul.msk.f32.gmra.mxu2 %vm79_vm0, %v1599_v58 }
 0x195   :  { %1287 = vmatmul.msk.f32.gmra.mxu2 %vm79_vm0, %v1608_v3 }
 0x19d   :  { %1288 = vmatmul.msk.f32.gmra.mxu2 %vm79_vm0, %v1613_v9 }
 0x1a5   :  { %1289 = vmatmul.msk.f32.gmra.mxu2 %vm79_vm0, %v1617_v12 }
 0x1aa   :  { %v350_v14 = vpop.f32.mrf.mxu1 }
 0x1ab   :  { %v351_v15 = vadd.f32 %v1637_v13, %v350_v14 }
 0x1ad   :  { %v398_v16 = vadd.f32 %v1583_v29, %v351_v15 }
 0x1af   :  { %v1259_v17 = vmul.f32 -1.442695, %v398_v16 }
 0x1b1   :  { %1345 = vpow2.f32 %v1259_v17 }
 0x1b7   :  { %v1346_v18 = vpop.eup %1345 }
 0x1b8   :  { %v402_v19 = vadd.f32 1.0, %v1346_v18 }
 0x1ba   :  { %1347 = vrcp.f32 %v402_v19  ;;  %v414_v24 = vand.u32 2147483648, %v402_v19  ;;  %v412_v26 = vand.u32 2147483647, %v402_v19  ;;  %vm408_vm5 = vweird.f32 %v402_v19 }
 0x1bc   :  { %v415_v32 = vor.u32 1.1754944e-38, %v414_v24  ;;  %vm413_vm7 = vcmp.eq.f32.partialorder %v412_v26, 8.507059e+37 }
 0x1c0   :  { %v1348_v20 = vpop.eup %1347 }
 0x1c1   :  { %v404_v21 = vmul.f32 %v1348_v20, %v402_v19  ;;  %vm409_vm4 = vweird.f32 %v1348_v20 }
 0x1c2   :  { %vm410_vm6 = vmor %vm408_vm5, %vm409_vm4 }
 0x1c3   :  { %v405_v23 = vsub.f32 1.0, %v404_v21  ;;  %v353_v50 = vpop.f32.mrf.mxu1 }
 0x1c4   :  { %v354_v51 = vadd.f32 %v1637_v13, %v353_v50 }
 0x1c5   :  { %v406_v25 = vmul.f32 %v1348_v20, %v405_v23 }
 0x1c7   :  { %v407_v30 = vadd.f32 %v1348_v20, %v406_v25 }
 0x1c9   :  { %v411_v33 = vsel %vm410_vm6, %v1348_v20, %v407_v30 }
 0x1ca   :  { %v416_v29 = vsel %vm413_vm7, %v415_v32, %v411_v33 }
 0x1cb   :  { %v427_v34 = vmul.f32 %v425_v31, %v416_v29  ;;  %v434_v41 = vsub.f32 1.0, %v416_v29  ;;  %v440_v43 = vmul.f32 0.0, %v416_v29  ;;  %v356_v23 = vpop.f32.mrf.mxu1 }
 0x1cc   :  { %v357_v24 = vadd.f32 %v1637_v13, %v356_v23 }
 0x1cd   :  { %429 = vrot.lane.b32.xlu1 %v427_v34, %s1480_s0 }
 0x23f   :  { %v430_v35 = vpop.permute.xlu1 %429 }
 0x240   :  { %v432_v36 = vadd.f32 %v430_v35, %v351_v15 }
 0x242   :  { %1349 = vtanh.f32 %v432_v36 }
 0x248   :  { %v1350_v38 = vpop.eup %1349 }
 0x249   :  { %436 = vrot.lane.b32.xlu1 %v1350_v38, %s1482_s11 }
 0x2bb   :  { %v437_v42 = vpop.permute.xlu1 %436 }
 0x2bc   :  { %v439_v44 = vmul.f32 %v437_v42, %v434_v41 }
 0x2be   :  { %v1643_v45 = vadd.f32 %v440_v43, %v439_v44 }
 0x2c0   :  { %443 = vrot.lane.b32.xlu2 %v1643_v45, %s1482_s11 }
 0x31a   :  { %v444_v47 = vpop.permute.xlu2 %443 }
 0x31b   :  { %1260 = vmatmul.msk.f32.vlgmr.msra.gmra.mxu3 %vm79_vm0, %v444_v47  ;;  %1274 = vmatmul.msk.f32.vlgmr.msrb.gmra.mxu0 %vm79_vm0, %v444_v47 }
 0x31c   :  { %591 = vmatpush.msra.mxu3 %v1549_v28 }
 0x31e   :  { %592 = vmatpush.msra.mxu3 %v1554_v37 }
 0x39e   :  { %v464_v48 = vpop.f32.mrf.mxu3 }
 0x39f   :  { %v487_v49 = vadd.f32 %v464_v48, %v1581_v27  ;;  %v467_v53 = vadd.f32 %v464_v48, %v354_v51 }
 0x3a1   :  { %489 = vrot.lane.b32.xlu2 %v487_v49, %s1481_s10  ;;  %v1261_v54 = vmul.f32 -1.442695, %v467_v53 }
 0x3a3   :  { %1351 = vpow2.f32 %v1261_v54 }
 0x3a9   :  { %v1352_v55 = vpop.eup %1351 }
 0x3aa   :  { %v471_v56 = vadd.f32 1.0, %v1352_v55 }
 0x3ac   :  { %1353 = vrcp.f32 %v471_v56  ;;  %v483_v0 = vand.u32 2147483648, %v471_v56  ;;  %vm477_vm9 = vweird.f32 %v471_v56  ;;  %v481_v1 = vand.u32 2147483647, %v471_v56 }
 0x3ae   :  { %v484_v4 = vor.u32 1.1754944e-38, %v483_v0  ;;  %vm482_vm11 = vcmp.eq.f32.partialorder %v481_v1, 8.507059e+37 }
 0x3b2   :  { %v1354_v57 = vpop.eup %1353 }
 0x3b3   :  { %v473_v59 = vmul.f32 %v1354_v57, %v471_v56  ;;  %vm478_vm8 = vweird.f32 %v1354_v57 }
 0x3b4   :  { %vm479_vm10 = vmor %vm477_vm9, %vm478_vm8 }
 0x3b5   :  { %v474_v60 = vsub.f32 1.0, %v473_v59  ;;  %v359_v59 = vpop.f32.mrf.mxu2 }
 0x3b7   :  { %v475_v61 = vmul.f32 %v1354_v57, %v474_v60  ;;  %v360_v60 = vadd.f32 %v1637_v13, %v359_v59 }
 0x3b9   :  { %v476_v63 = vadd.f32 %v1354_v57, %v475_v61 }
 0x3bb   :  { %v480_v2 = vsel %vm479_vm10, %v1354_v57, %v476_v63 }
 0x3bc   :  { %v485_v6 = vsel %vm482_vm11, %v484_v4, %v480_v2 }
 0x3bd   :  { %v499_v14 = vsub.f32 1.0, %v485_v6  ;;  %v505_v16 = vmul.f32 %v485_v6, %v1643_v45 }
 0x3fb   :  { %v490_v5 = vpop.permute.xlu2 %489 }
 0x3fc   :  { %v492_v7 = vmul.f32 %v490_v5, %v485_v6 }
 0x3fe   :  { %494 = vrot.lane.b32.xlu0 %v492_v7, %s1480_s0 }
 0x470   :  { %v495_v8 = vpop.permute.xlu0 %494 }
 0x471   :  { %v497_v10 = vadd.f32 %v495_v8, %v354_v51 }
 0x473   :  { %1355 = vtanh.f32 %v497_v10 }
 0x479   :  { %v1356_v11 = vpop.eup %1355 }
 0x47a   :  { %501 = vrot.lane.b32.xlu1 %v1356_v11, %s1482_s11 }
 0x4ec   :  { %v502_v15 = vpop.permute.xlu1 %501 }
 0x4ed   :  { %v504_v17 = vmul.f32 %v502_v15, %v499_v14 }
 0x4ef   :  { %v1657_v18 = vadd.f32 %v505_v16, %v504_v17 }
 0x4f1   :  { %508 = vrot.lane.b32.xlu2 %v1657_v18, %s1482_s11 }
 0x54b   :  { %v509_v19 = vpop.permute.xlu2 %508 }
 0x54c   :  { %1262 = vmatmul.msk.f32.vlgmr.msrb.gmra.mxu3 %vm79_vm0, %v509_v19  ;;  %1275 = vmatmul.msk.f32.gmra.mxu0 %vm79_vm0, %v509_v19 }
 0x54d   :  { %656 = vmatpush.msrb.mxu3 %v1549_v28 }
 0x54f   :  { %657 = vmatpush.msrb.mxu3 %v1554_v37 }
 0x5cf   :  { %v529_v20 = vpop.f32.mrf.mxu3 }
 0x5d0   :  { %v552_v21 = vadd.f32 %v529_v20, %v1581_v27  ;;  %v532_v25 = vadd.f32 %v529_v20, %v357_v24 }
 0x5d2   :  { %554 = vrot.lane.b32.xlu0 %v552_v21, %s1481_s10  ;;  %v1263_v26 = vmul.f32 -1.442695, %v532_v25 }
 0x5d4   :  { %1357 = vpow2.f32 %v1263_v26 }
 0x5da   :  { %v1358_v30 = vpop.eup %1357 }
 0x5db   :  { %v536_v31 = vadd.f32 1.0, %v1358_v30 }
 0x5dd   :  { %1359 = vrcp.f32 %v536_v31  ;;  %v548_v36 = vand.u32 2147483648, %v536_v31  ;;  %vm542_vm13 = vweird.f32 %v536_v31  ;;  %v546_v38 = vand.u32 2147483647, %v536_v31 }
 0x5df   :  { %v549_v40 = vor.u32 1.1754944e-38, %v548_v36  ;;  %vm547_vm15 = vcmp.eq.f32.partialorder %v546_v38, 8.507059e+37 }
 0x5e3   :  { %v1360_v32 = vpop.eup %1359 }
 0x5e4   :  { %v538_v33 = vmul.f32 %v1360_v32, %v536_v31  ;;  %vm543_vm12 = vweird.f32 %v1360_v32 }
 0x5e5   :  { %vm544_vm14 = vmor %vm542_vm13, %vm543_vm12 }
 0x5e6   :  { %v539_v29 = vsub.f32 1.0, %v538_v33 }
 0x5e8   :  { %v540_v34 = vmul.f32 %v1360_v32, %v539_v29  ;;  %v362_v29 = vpop.f32.mrf.mxu2 }
 0x5ea   :  { %v541_v35 = vadd.f32 %v1360_v32, %v540_v34  ;;  %v363_v34 = vadd.f32 %v1637_v13, %v362_v29 }
 0x5ec   :  { %v545_v39 = vsel %vm544_vm14, %v1360_v32, %v541_v35 }
 0x5ed   :  { %v550_v42 = vsel %vm547_vm15, %v549_v40, %v545_v39 }
 0x5ee   :  { %v564_v49 = vsub.f32 1.0, %v550_v42  ;;  %v570_v51 = vmul.f32 %v550_v42, %v1657_v18 }
 0x644   :  { %v555_v41 = vpop.permute.xlu0 %554 }
 0x645   :  { %v557_v43 = vmul.f32 %v555_v41, %v550_v42 }
 0x647   :  { %559 = vrot.lane.b32.xlu1 %v557_v43, %s1480_s0 }
 0x6b9   :  { %v560_v44 = vpop.permute.xlu1 %559 }
 0x6ba   :  { %v562_v47 = vadd.f32 %v560_v44, %v357_v24 }
 0x6bc   :  { %1361 = vtanh.f32 %v562_v47 }
 0x6c2   :  { %v1362_v48 = vpop.eup %1361 }
 0x6c3   :  { %566 = vrot.lane.b32.xlu2 %v1362_v48, %s1482_s11 }
 0x71d   :  { %v567_v50 = vpop.permute.xlu2 %566 }
 0x71e   :  { %v569_v53 = vmul.f32 %v567_v50, %v564_v49 }
 0x720   :  { %v1671_v54 = vadd.f32 %v570_v51, %v569_v53 }
 0x722   :  { %573 = vrot.lane.b32.xlu0 %v1671_v54, %s1482_s11 }
 0x794   :  { %v574_v55 = vpop.permute.xlu0 %573 }
 0x795   :  { %1264 = vmatmul.msk.f32.vlgmr.msra.gmra.mxu3 %vm79_vm0, %v574_v55  ;;  %1276 = vmatmul.msk.f32.gmra.mxu0 %vm79_vm0, %v574_v55 }
 0x796   :  { %721 = vmatpush.msra.mxu3 %v1549_v28 }
 0x798   :  { %722 = vmatpush.msra.mxu3 %v1554_v37 }
 0x818   :  { %v594_v56 = vpop.f32.mrf.mxu3 }
 0x819   :  { %v617_v57 = vadd.f32 %v594_v56, %v1581_v27  ;;  %v597_v61 = vadd.f32 %v594_v56, %v360_v60 }
 0x81b   :  { %619 = vrot.lane.b32.xlu1 %v617_v57, %s1481_s10  ;;  %v1265_v63 = vmul.f32 -1.442695, %v597_v61 }
 0x81d   :  { %1363 = vpow2.f32 %v1265_v63 }
 0x823   :  { %v1364_v0 = vpop.eup %1363 }
 0x824   :  { %v601_v1 = vadd.f32 1.0, %v1364_v0 }
 0x826   :  { %1365 = vrcp.f32 %v601_v1  ;;  %v613_v8 = vand.u32 2147483648, %v601_v1  ;;  %vm607_vm3 = vweird.f32 %v601_v1  ;;  %v611_v10 = vand.u32 2147483647, %v601_v1 }
 0x828   :  { %v614_v14 = vor.u32 1.1754944e-38, %v613_v8  ;;  %vm612_vm5 = vcmp.eq.f32.partialorder %v611_v10, 8.507059e+37 }
 0x82c   :  { %v1366_v2 = vpop.eup %1365 }
 0x82d   :  { %v603_v4 = vmul.f32 %v1366_v2, %v601_v1  ;;  %vm608_vm2 = vweird.f32 %v1366_v2 }
 0x82e   :  { %vm609_vm4 = vmor %vm607_vm3, %vm608_vm2 }
 0x82f   :  { %v604_v5 = vsub.f32 1.0, %v603_v4 }
 0x831   :  { %v605_v6 = vmul.f32 %v1366_v2, %v604_v5 }
 0x833   :  { %v606_v7 = vadd.f32 %v1366_v2, %v605_v6  ;;  %v365_v6 = vpop.f32.mrf.mxu2 }
 0x835   :  { %v610_v11 = vsel %vm609_vm4, %v1366_v2, %v606_v7  ;;  %v366_v7 = vadd.f32 %v1637_v13, %v365_v6 }
 0x836   :  { %v615_v16 = vsel %vm612_vm5, %v614_v14, %v610_v11 }
 0x837   :  { %v629_v23 = vsub.f32 1.0, %v615_v16  ;;  %v635_v25 = vmul.f32 %v615_v16, %v1671_v54 }
 0x88d   :  { %v620_v15 = vpop.permute.xlu1 %619 }
 0x88e   :  { %v622_v17 = vmul.f32 %v620_v15, %v615_v16 }
 0x890   :  { %624 = vrot.lane.b32.xlu2 %v622_v17, %s1480_s0 }
 0x8ea   :  { %v625_v19 = vpop.permute.xlu2 %624 }
 0x8eb   :  { %v627_v20 = vadd.f32 %v625_v19, %v360_v60 }
 0x8ed   :  { %1367 = vtanh.f32 %v627_v20 }
 0x8f3   :  { %v1368_v21 = vpop.eup %1367 }
 0x8f4   :  { %631 = vrot.lane.b32.xlu0 %v1368_v21, %s1482_s11 }
 0x966   :  { %v632_v24 = vpop.permute.xlu0 %631 }
 0x967   :  { %v634_v26 = vmul.f32 %v632_v24, %v629_v23 }
 0x969   :  { %v1685_v30 = vadd.f32 %v635_v25, %v634_v26 }
 0x96b   :  { %638 = vrot.lane.b32.xlu1 %v1685_v30, %s1482_s11 }
 0x9dd   :  { %v639_v31 = vpop.permute.xlu1 %638 }
 0x9de   :  { %1266 = vmatmul.msk.f32.vlgmr.msrb.gmra.mxu3 %vm79_vm0, %v639_v31  ;;  %1277 = vmatmul.msk.f32.gmra.mxu0 %vm79_vm0, %v639_v31 }
 0x9df   :  { %786 = vmatpush.msrb.mxu3 %v1549_v28 }
 0x9e1   :  { %787 = vmatpush.msrb.mxu3 %v1554_v37 }
 0xa61   :  { %v659_v32 = vpop.f32.mrf.mxu3 }
 0xa62   :  { %v682_v33 = vadd.f32 %v659_v32, %v1581_v27  ;;  %v662_v35 = vadd.f32 %v659_v32, %v363_v34 }
 0xa64   :  { %684 = vrot.lane.b32.xlu2 %v682_v33, %s1481_s10  ;;  %v1267_v36 = vmul.f32 -1.442695, %v662_v35 }
 0xa66   :  { %1369 = vpow2.f32 %v1267_v36 }
 0xa6c   :  { %v1370_v38 = vpop.eup %1369 }
 0xa6d   :  { %v666_v39 = vadd.f32 1.0, %v1370_v38 }
 0xa6f   :  { %1371 = vrcp.f32 %v666_v39  ;;  %v678_v47 = vand.u32 2147483648, %v666_v39  ;;  %vm672_vm7 = vweird.f32 %v666_v39  ;;  %v676_v48 = vand.u32 2147483647, %v666_v39 }
 0xa71   :  { %v679_v50 = vor.u32 1.1754944e-38, %v678_v47  ;;  %vm677_vm9 = vcmp.eq.f32.partialorder %v676_v48, 8.507059e+37 }
 0xa75   :  { %v1372_v40 = vpop.eup %1371 }
 0xa76   :  { %v668_v41 = vmul.f32 %v1372_v40, %v666_v39  ;;  %vm673_vm6 = vweird.f32 %v1372_v40 }
 0xa77   :  { %vm674_vm8 = vmor %vm672_vm7, %vm673_vm6 }
 0xa78   :  { %v669_v42 = vsub.f32 1.0, %v668_v41 }
 0xa7a   :  { %v670_v43 = vmul.f32 %v1372_v40, %v669_v42  ;;  %v368_v42 = vpop.f32.mrf.mxu2 }
 0xa7c   :  { %v671_v44 = vadd.f32 %v1372_v40, %v670_v43  ;;  %v369_v43 = vadd.f32 %v1637_v13, %v368_v42 }
 0xa7e   :  { %v675_v49 = vsel %vm674_vm8, %v1372_v40, %v671_v44 }
 0xa7f   :  { %v680_v53 = vsel %vm677_vm9, %v679_v50, %v675_v49 }
 0xa80   :  { %v694_v60 = vsub.f32 1.0, %v680_v53  ;;  %v700_v63 = vmul.f32 %v680_v53, %v1685_v30 }
 0xabe   :  { %v685_v51 = vpop.permute.xlu2 %684 }
 0xabf   :  { %v687_v55 = vmul.f32 %v685_v51, %v680_v53 }
 0xac1   :  { %689 = vrot.lane.b32.xlu0 %v687_v55, %s1480_s0 }
 0xb33   :  { %v690_v56 = vpop.permute.xlu0 %689 }
 0xb34   :  { %v692_v57 = vadd.f32 %v690_v56, %v363_v34 }
 0xb36   :  { %1373 = vtanh.f32 %v692_v57 }
 0xb3c   :  { %v1374_v59 = vpop.eup %1373 }
 0xb3d   :  { %696 = vrot.lane.b32.xlu1 %v1374_v59, %s1482_s11 }
 0xbaf   :  { %v697_v61 = vpop.permute.xlu1 %696 }
 0xbb0   :  { %v699_v0 = vmul.f32 %v697_v61, %v694_v60 }
 0xbb2   :  { %v1699_v1 = vadd.f32 %v700_v63, %v699_v0 }
 0xbb4   :  { %703 = vrot.lane.b32.xlu2 %v1699_v1, %s1482_s11 }
 0xc0e   :  { %v704_v2 = vpop.permute.xlu2 %703 }
 0xc0f   :  { %1268 = vmatmul.msk.f32.vlgmr.msra.gmra.mxu3 %vm79_vm0, %v704_v2  ;;  %1278 = vmatmul.msk.f32.gmra.mxu0 %vm79_vm0, %v704_v2 }
 0xc10   :  { %851 = vmatpush.msra.mxu3 %v1549_v28 }
 0xc12   :  { %852 = vmatpush.msra.mxu3 %v1554_v37 }
 0xc92   :  { %v724_v4 = vpop.f32.mrf.mxu3 }
 0xc93   :  { %v747_v5 = vadd.f32 %v724_v4, %v1581_v27  ;;  %v727_v8 = vadd.f32 %v724_v4, %v366_v7 }
 0xc95   :  { %749 = vrot.lane.b32.xlu0 %v747_v5, %s1481_s10  ;;  %v1269_v10 = vmul.f32 -1.442695, %v727_v8 }
 0xc97   :  { %1375 = vpow2.f32 %v1269_v10 }
 0xc9d   :  { %v1376_v11 = vpop.eup %1375 }
 0xc9e   :  { %v731_v14 = vadd.f32 1.0, %v1376_v11 }
 0xca0   :  { %1377 = vrcp.f32 %v731_v14  ;;  %v743_v37 = vand.u32 2147483648, %v731_v14  ;;  %vm737_vm11 = vweird.f32 %v731_v14  ;;  %v741_v20 = vand.u32 2147483647, %v731_v14 }
 0xca2   :  { %v744_v23 = vor.u32 1.1754944e-38, %v743_v37  ;;  %vm742_vm13 = vcmp.eq.f32.partialorder %v741_v20, 8.507059e+37 }
 0xca6   :  { %v1378_v15 = vpop.eup %1377 }
 0xca7   :  { %v733_v16 = vmul.f32 %v1378_v15, %v731_v14  ;;  %vm738_vm10 = vweird.f32 %v1378_v15 }
 0xca8   :  { %vm739_vm12 = vmor %vm737_vm11, %vm738_vm10 }
 0xca9   :  { %v734_v17 = vsub.f32 1.0, %v733_v16 }
 0xcab   :  { %v735_v28 = vmul.f32 %v1378_v15, %v734_v17 }
 0xcad   :  { %v736_v19 = vadd.f32 %v1378_v15, %v735_v28  ;;  %v371_v28 = vpop.f32.mrf.mxu2 }
 0xcaf   :  { %v740_v21 = vsel %vm739_vm12, %v1378_v15, %v736_v19  ;;  %v372_v19 = vadd.f32 %v1637_v13, %v371_v28 }
 0xcb0   :  { %v745_v25 = vsel %vm742_vm13, %v744_v23, %v740_v21 }
 0xcb1   :  { %v759_v29 = vsub.f32 1.0, %v745_v25  ;;  %v765_v35 = vmul.f32 %v745_v25, %v1699_v1 }
 0xd07   :  { %v750_v24 = vpop.permute.xlu0 %749 }
 0xd08   :  { %v752_v26 = vmul.f32 %v750_v24, %v745_v25 }
 0xd0a   :  { %754 = vrot.lane.b32.xlu1 %v752_v26, %s1480_s0 }
 0xd7c   :  { %v755_v31 = vpop.permute.xlu1 %754 }
 0xd7d   :  { %v757_v32 = vadd.f32 %v755_v31, %v366_v7 }
 0xd7f   :  { %1379 = vtanh.f32 %v757_v32 }
 0xd85   :  { %v1380_v33 = vpop.eup %1379 }
 0xd86   :  { %761 = vrot.lane.b32.xlu2 %v1380_v33, %s1482_s11 }
 0xde0   :  { %v762_v34 = vpop.permute.xlu2 %761 }
 0xde1   :  { %v764_v36 = vmul.f32 %v762_v34, %v759_v29 }
 0xde3   :  { %v1713_v38 = vadd.f32 %v765_v35, %v764_v36 }
 0xde5   :  { %768 = vrot.lane.b32.xlu0 %v1713_v38, %s1482_s11 }
 0xe57   :  { %v769_v39 = vpop.permute.xlu0 %768 }
 0xe58   :  { %1270 = vmatmul.msk.f32.vlgmr.msrb.gmra.mxu3 %vm79_vm0, %v769_v39  ;;  %1279 = vmatmul.msk.f32.gmra.mxu0 %vm79_vm0, %v769_v39  ;;  %v933_v39 = vmul.f32 %v1699_v1, %v1699_v1  ;;  %v903_v1 = vmul.f32 %v1613_v9, %v1613_v9 }
 0xedb   :  { %v789_v40 = vpop.f32.mrf.mxu3 }
 0xedc   :  { %v812_v41 = vadd.f32 %v789_v40, %v1581_v27  ;;  %v792_v44 = vadd.f32 %v789_v40, %v369_v43 }
 0xede   :  { %814 = vrot.lane.b32.xlu1 %v812_v41, %s1481_s10  ;;  %v1271_v47 = vmul.f32 -1.442695, %v792_v44  ;;  %v932_v44 = vmul.f32 %v1685_v30, %v1685_v30 }
 0xee0   :  { %1381 = vpow2.f32 %v1271_v47  ;;  %v929_v47 = vmul.f32 %v1643_v45, %v1643_v45 }
 0xee6   :  { %v1382_v48 = vpop.eup %1381 }
 0xee7   :  { %v796_v49 = vadd.f32 1.0, %v1382_v48  ;;  %v923_v48 = vsel %vm79_vm0, %v903_v1, 0.0 }
 0xee9   :  { %1383 = vrcp.f32 %v796_v49  ;;  %v808_v57 = vand.u32 2147483648, %v796_v49  ;;  %vm802_vm15 = vweird.f32 %v796_v49  ;;  %v806_v59 = vand.u32 2147483647, %v796_v49 }
 0xeeb   :  { %v809_v61 = vor.u32 1.1754944e-38, %v808_v57  ;;  %vm807_vm3 = vcmp.eq.f32.partialorder %v806_v59, 8.507059e+37  ;;  %v934_v57 = vmul.f32 %v1713_v38, %v1713_v38 }
 0xeef   :  { %v1384_v50 = vpop.eup %1383 }
 0xef0   :  { %v798_v51 = vmul.f32 %v1384_v50, %v796_v49  ;;  %vm803_vm14 = vweird.f32 %v1384_v50  ;;  %v901_v49 = vmul.f32 %v1599_v58, %v1599_v58  ;;  %v930_v58 = vmul.f32 %v1657_v18, %v1657_v18 }
 0xef1   :  { %vm804_vm2 = vmor %vm802_vm15, %vm803_vm14 }
 0xef2   :  { %v799_v53 = vsub.f32 1.0, %v798_v51 }
 0xef4   :  { %v800_v55 = vmul.f32 %v1384_v50, %v799_v53 }
 0xef6   :  { %v801_v56 = vadd.f32 %v1384_v50, %v800_v55 }
 0xef8   :  { %v805_v60 = vsel %vm804_vm2, %v1384_v50, %v801_v56  ;;  %v917_v50 = vsel %vm79_vm0, %v901_v49, 0.0 }
 0xef9   :  { %v810_v0 = vsel %vm807_vm3, %v809_v61, %v805_v60  ;;  %v931_v61 = vmul.f32 %v1671_v54, %v1671_v54 }
 0xefa   :  { %v824_v7 = vsub.f32 1.0, %v810_v0  ;;  %v830_v10 = vmul.f32 %v810_v0, %v1713_v38 }
 0xf50   :  { %v815_v63 = vpop.permute.xlu1 %814 }
 0xf51   :  { %v817_v2 = vmul.f32 %v815_v63, %v810_v0  ;;  %v898_v63 = vmul.f32 %v1595_v52, %v1595_v52 }
 0xf53   :  { %819 = vrot.lane.b32.xlu2 %v817_v2, %s1480_s0  ;;  %v908_v38 = vsel %vm79_vm0, %v898_v63, 0.0  ;;  %v904_v2 = vmul.f32 %v1617_v12, %v1617_v12 }
 0xfad   :  { %v820_v4 = vpop.permute.xlu2 %819 }
 0xfae   :  { %v822_v5 = vadd.f32 %v820_v4, %v369_v43  ;;  %v926_v4 = vsel %vm79_vm0, %v904_v2, 0.0 }
 0xfb0   :  { %1385 = vtanh.f32 %v822_v5  ;;  %v902_v5 = vmul.f32 %v1608_v3, %v1608_v3  ;;  %v900_v3 = vmul.f32 %v1590_v46, %v1590_v46 }
 0xfb2   :  { %v920_v52 = vsel %vm79_vm0, %v902_v5, 0.0 }
 0xfb6   :  { %v1386_v6 = vpop.eup %1385 }
 0xfb7   :  { %826 = vrot.lane.b32.xlu0 %v1386_v6, %s1482_s11 }
0x1029   :  { %v827_v8 = vpop.permute.xlu0 %826 }
0x102a   :  { %v829_v11 = vmul.f32 %v827_v8, %v824_v7  ;;  %v899_v8 = vmul.f32 %v1604_v62, %v1604_v62 }
0x102c   :  { %v831_v14 = vadd.f32 %v830_v10, %v829_v11  ;;  %v911_v12 = vsel %vm79_vm0, %v899_v8, 0.0  ;;  %v1797_v8 = vstv %s44_s12 }
0x102e   :  { %833 = vrot.lane.b32.xlu1 %v831_v14, %s1482_s11  ;;  %v935_v43 = vmul.f32 %v831_v14, %v831_v14 }
0x10a0   :  { %v834_v15 = vpop.permute.xlu1 %833 }
0x10a1   :  { %1272 = vmatmul.msk.f32.vlgmr.msra.gmra.mxu3 %vm79_vm0, %v834_v15  ;;  %1280 = vmatmul.msk.f32.gmra.mxu0 %vm79_vm0, %v834_v15  ;;  %v914_v15 = vsel %vm79_vm0, %v900_v3, 0.0 }
0x1124   :  { %v854_v16 = vpop.f32.mrf.mxu3 }
0x1125   :  { %v877_v17 = vadd.f32 %v854_v16, %v1581_v27  ;;  %v857_v37 = vadd.f32 %v854_v16, %v372_v19 }
0x1127   :  { %879 = vrot.lane.b32.xlu2 %v877_v17, %s1481_s10  ;;  %v1273_v20 = vmul.f32 -1.442695, %v857_v37 }
0x1129   :  { %1387 = vpow2.f32 %v1273_v20  ;;  %v897_v20 = vmul.f32 %v1575_v22, %v1575_v22 }
0x112b   :  { %v905_v46 = vsel %vm79_vm0, %v897_v20, 0.0 }
0x112f   :  { %v1388_v21 = vpop.eup %1387 }
0x1130   :  { %v861_v23 = vadd.f32 1.0, %v1388_v21  ;;  %v1787_v21 = vpop.f32.mrf.mxu2 }
0x1132   :  { %1389 = vrcp.f32 %v861_v23  ;;  %v873_v33 = vand.u32 2147483648, %v861_v23  ;;  %vm867_vm5 = vweird.f32 %v861_v23  ;;  %v871_v27 = vand.u32 2147483647, %v861_v23 }
0x1134   :  { %v874_v34 = vor.u32 1.1754944e-38, %v873_v33  ;;  %vm872_vm7 = vcmp.eq.f32.partialorder %v871_v27, 8.507059e+37 }
0x1138   :  { %v1390_v24 = vpop.eup %1389 }
0x1139   :  { %v863_v25 = vmul.f32 %v1390_v24, %v861_v23  ;;  %vm868_vm4 = vweird.f32 %v1390_v24  ;;  %v1067_v23 = vpop.f32.mrf.mxu2 }
0x113a   :  { %vm869_vm6 = vmor %vm867_vm5, %vm868_vm4 }
0x113b   :  { %v864_v26 = vsub.f32 1.0, %v863_v25 }
0x113d   :  { %v865_v31 = vmul.f32 %v1390_v24, %v864_v26 }
0x113f   :  { %v866_v32 = vadd.f32 %v1390_v24, %v865_v31 }
0x1141   :  { %v870_v29 = vsel %vm869_vm6, %v1390_v24, %v866_v32  ;;  %v1789_v24 = vpop.f32.mrf.mxu0  ;;  %v1070_v25 = vpop.f32.mrf.mxu2 }
0x1142   :  { %v875_v35 = vsel %vm872_vm7, %v874_v34, %v870_v29 }
0x1143   :  { %v889_v30 = vsub.f32 1.0, %v875_v35  ;;  %v895_v53 = vmul.f32 %v875_v35, %v831_v14 }
0x1149   :  { %v1026_v26 = vpop.f32.mrf.mxu0  ;;  %v1073_v32 = vpop.f32.mrf.mxu2 }
0x1151   :  { %v1029_v31 = vpop.f32.mrf.mxu0  ;;  %v1076_v29 = vpop.f32.mrf.mxu2 }
0x1159   :  { %v1032_v27 = vpop.f32.mrf.mxu0 }
0x1181   :  { %v880_v13 = vpop.permute.xlu2 %879 }
0x1182   :  { %v882_v36 = vmul.f32 %v880_v13, %v875_v35  ;;  %v1035_v13 = vpop.f32.mrf.mxu0  ;;  %v1079_v35 = vpop.f32.mrf.mxu2 }
0x1184   :  { %884 = vrot.lane.b32.xlu0 %v882_v36, %s1480_s0 }
0x118a   :  { %v1038_v22 = vpop.f32.mrf.mxu0 }
0x118c   :  { %953 = vrot.lane.b32.xlu0 %v933_v39, %s1482_s11 }
0x11f6   :  { %v885_v40 = vpop.permute.xlu0 %884 }
0x11f7   :  { %v887_v41 = vadd.f32 %v885_v40, %v372_v19 }
0x11f9   :  { %1391 = vtanh.f32 %v887_v41  ;;  %v1082_v41 = vpop.f32.mrf.mxu2 }
0x11fe   :  { %v954_v6 = vpop.permute.xlu0 %953 }
0x11ff   :  { %v1392_v42 = vpop.eup %1391  ;;  %v981_v7 = vsel %vm79_vm0, %v954_v6, 0.0 }
0x1200   :  { %891 = vrot.lane.b32.xlu1 %v1392_v42, %s1482_s11  ;;  %v1041_v42 = vpop.f32.mrf.mxu0 }
0x1208   :  { %957 = vrot.lane.b32.xlu1 %v935_v43, %s1482_s11 }
0x1210   :  { %951 = vrot.lane.b32.xlu1 %v932_v44, %s1482_s11  ;;  %v1791_v44 = vld [vmem:[#allocation2 + $0xb8] ss:$0 sm:$0xff] }
0x1218   :  { %945 = vrot.lane.b32.xlu1 %v929_v47, %s1482_s11 }
0x1242   :  { %924 = vadd.xlane.f32.xlu1 %v923_v48  ;;  %v1083_v48 = vadd.f32 %v1082_v41, %v1041_v42 }
0x124a   :  { %918 = vadd.xlane.f32.xlu1 %v917_v50 }
0x1272   :  { %v892_v51 = vpop.permute.xlu1 %891 }
0x1273   :  { %v894_v55 = vmul.f32 %v892_v51, %v889_v30  ;;  %v1080_v30 = vadd.f32 %v1079_v35, %v1038_v22  ;;  %v60_v22 = vld [vmem:[#allocation2 + $0x70] sm:$0xff] }
0x1275   :  { %v896_v56 = vadd.f32 %v895_v53, %v894_v55  ;;  %v1103_v55 = vmul.f32 2.0, %v1083_v48  ;;  %v1065_v48 = vadd.f32 %v1787_v21, %v1789_v24 }
0x1277   :  { %1002 = vrot.lane.b32.xlu2 %v896_v56, %s1482_s11  ;;  %v936_v45 = vmul.f32 %v896_v56, %v896_v56 }
0x1279   :  { %959 = vrot.lane.b32.xlu0 %v936_v45, %s1482_s11 }
0x127a   :  { %v958_v9 = vpop.permute.xlu1 %957 }
0x127b   :  { %v987_v54 = vsel %vm79_vm0, %v958_v9, 0.0 }
0x127f   :  { %955 = vrot.lane.b32.xlu2 %v934_v57, %s1482_s11  ;;  %v1077_v57 = vadd.f32 %v1076_v29, %v1035_v13 }
0x1281   :  { %947 = vrot.lane.b32.xlu0 %v930_v58, %s1482_s11 }
0x1282   :  { %v952_v59 = vpop.permute.xlu1 %951 }
0x1283   :  { %v978_v60 = vsel %vm79_vm0, %v952_v59, 0.0  ;;  %v1085_v59 = vpop.f32.mrf.mxu2 }
0x1284   :  { %979 = vadd.xlane.f32.xlu1 %v978_v60  ;;  %v1074_v60 = vadd.f32 %v1073_v32, %v1032_v27  ;;  %v61_v32 = vld [vmem:[#allocation2 + $0x78] sm:$0xff] }
0x1286   :  { %v1100_v6 = vmul.f32 2.0, %v1074_v60 }
0x1287   :  { %949 = vrot.lane.b32.xlu2 %v931_v61, %s1482_s11  ;;  %v1102_v61 = vmul.f32 2.0, %v1080_v30 }
0x128a   :  { %v946_v0 = vpop.permute.xlu1 %945 }
0x128b   :  { %v969_v18 = vsel %vm79_vm0, %v946_v0, 0.0 }
0x128c   :  { %909 = vadd.xlane.f32.xlu1 %v908_v38 }
0x1294   :  { %970 = vadd.xlane.f32.xlu1 %v969_v18 }
0x12b0   :  { %927 = vadd.xlane.f32.xlu2 %v926_v4 }
0x12b5   :  { %v925_v36 = vpop.xlane.xlu1 %924 }
0x12b8   :  { %988 = vadd.xlane.f32.xlu2 %v987_v54  ;;  %v1101_v54 = vmul.f32 2.0, %v1077_v57 }
0x12bd   :  { %v919_v43 = vpop.xlane.xlu1 %918 }
0x12c0   :  { %921 = vadd.xlane.f32.xlu2 %v920_v52 }
0x12c8   :  { %982 = vadd.xlane.f32.xlu2 %v981_v7 }
0x12d0   :  { %912 = vadd.xlane.f32.xlu2 %v911_v12 }
0x12d1   :  { %v1003_v10 = vpop.permute.xlu2 %1002 }
0x12d2   :  { %1281 = vmatmul.msk.f32.gmra.mxu0 %vm79_vm0, %v1003_v10 }
0x12d9   :  { %v956_v11 = vpop.permute.xlu2 %955 }
0x12da   :  { %v984_v14 = vsel %vm79_vm0, %v956_v11, 0.0 }
0x12db   :  { %985 = vadd.xlane.f32.xlu0 %v984_v14 }
0x12e1   :  { %v950_v62 = vpop.permute.xlu2 %949 }
0x12e2   :  { %v975_v19 = vsel %vm79_vm0, %v950_v62, 0.0  ;;  %v1068_v62 = vadd.f32 %v1067_v23, %v1026_v26 }
0x12e3   :  { %915 = vadd.xlane.f32.xlu0 %v914_v15 }
0x12e4   :  { %v1098_v23 = vmul.f32 2.0, %v1068_v62 }
0x12eb   :  { %v960_v16 = vpop.permute.xlu0 %959 }
0x12ec   :  { %v990_v17 = vsel %vm79_vm0, %v960_v16, 0.0  ;;  %v63_v16 = vld [vmem:[#allocation2 + $0x88] sm:$0xff] }
0x12ed   :  { %991 = vadd.xlane.f32.xlu0 %v990_v17  ;;  %v62_v17 = vld [vmem:[#allocation2 + $0x80] sm:$0xff]  ;;  %1186 = vmatpush.msrb.mxu3 %v63_v16 }
0x12ef   :  { %1187 = vmatpush.msrb.mxu3 %v62_v17 }
0x12f1   :  { %1188 = vmatpush.msrb.mxu3 %v61_v32 }
0x12f3   :  { %v948_v28 = vpop.permute.xlu0 %947  ;;  %1189 = vmatpush.msrb.mxu3 %v60_v22 }
0x12f4   :  { %v972_v37 = vsel %vm79_vm0, %v948_v28, 0.0  ;;  %v1071_v28 = vadd.f32 %v1070_v25, %v1029_v31  ;;  %vm1146_vm0 = vcmask 523264  }
0x12f5   :  { %976 = vadd.xlane.f32.xlu0 %v975_v19  ;;  %973 = vadd.xlane.f32.xlu2 %v972_v37 }
0x12f6   :  { %v1099_v25 = vmul.f32 2.0, %v1071_v28 }
0x12f7   :  { %v980_v56 = vpop.xlane.xlu1 %979 }
0x12fd   :  { %906 = vadd.xlane.f32.xlu0 %v905_v46 }
0x12ff   :  { %v910_v19 = vpop.xlane.xlu1 %909 }
0x1323   :  { %v928_v33 = vpop.xlane.xlu2 %927 }
0x132b   :  { %v989_v34 = vpop.xlane.xlu2 %988 }
0x132c   :  { %v999_v47 = vadd.f32 %v989_v34, %v925_v36 }
0x132e   :  { %v1095_v51 = vadd.f32 %v1791_v44, %v999_v47 }
0x1330   :  { %v1111_v63 = vsub.f32 %v1095_v51, %v1103_v55  ;;  %v971_v51 = vpop.xlane.xlu1 %970 }
0x1332   :  { %v1119_v7 = vmax.f32 %v1111_v63, 0.0 }
0x1333   :  { %v922_v39 = vpop.xlane.xlu2 %921 }
0x1334   :  { %v1128_v37 = vmul.f32 %v1797_v8, %v1119_v7  ;;  %v1483_v7 = vmov 0  }
0x1335   :  { %1306 = vset.pattern.permute.xlu2 %v1483_v7  ;;  %1307 = vset.pattern.permute.xlu0 %v1483_v7 }
0x1336   :  { %v1142_v26 = vmul.f32 1.442695, %v1128_v37 }
0x133b   :  { %v983_v1 = vpop.xlane.xlu2 %982 }
0x133c   :  { %v997_v53 = vadd.f32 %v983_v1, %v919_v43 }
0x133e   :  { %v1093_v38 = vadd.f32 %v1791_v44, %v997_v53 }
0x1340   :  { %v1109_v12 = vsub.f32 %v1093_v38, %v1101_v54 }
0x1342   :  { %v1117_v20 = vmax.f32 %v1109_v12, 0.0 }
0x1343   :  { %v913_v18 = vpop.xlane.xlu2 %912 }
0x1344   :  { %v1126_v31 = vmul.f32 %v1797_v8, %v1117_v20 }
0x134e   :  { %v986_v40 = vpop.xlane.xlu0 %985 }
0x134f   :  { %v998_v49 = vadd.f32 %v986_v40, %v922_v39  ;;  %v1044_v9 = vpop.f32.mrf.mxu0 }
0x1350   :  { %v1086_v0 = vadd.f32 %v1085_v59, %v1044_v9 }
0x1351   :  { %v1094_v45 = vadd.f32 %v1791_v44, %v998_v49  ;;  %v1138_v49 = vmul.f32 1.442695, %v1126_v31 }
0x1352   :  { %v1104_v10 = vmul.f32 2.0, %v1086_v0 }
0x1353   :  { %v1110_v2 = vsub.f32 %v1094_v45, %v1102_v61 }
0x1355   :  { %v1118_v14 = vmax.f32 %v1110_v2, 0.0 }
0x1356   :  { %v916_v50 = vpop.xlane.xlu0 %915 }
0x1357   :  { %v996_v58 = vadd.f32 %v980_v56, %v916_v50 }
0x1359   :  { %v1092_v5 = vadd.f32 %v1791_v44, %v996_v58  ;;  %v1097_v58 = vmul.f32 2.0, %v1065_v48 }
0x135b   :  { %v1108_v3 = vsub.f32 %v1092_v5, %v1100_v6  ;;  %v64_v5 = vld [vmem:[#allocation2 + $0x90] sm:$0xff] }
0x135d   :  { %v1116_v34 = vmax.f32 %v1108_v3, 0.0 }
0x135f   :  { %v1125_v43 = vmul.f32 %v1797_v8, %v1116_v34 }
0x1360   :  { %v992_v4 = vpop.xlane.xlu0 %991 }
0x1361   :  { %v1000_v52 = vadd.f32 %v992_v4, %v928_v33  ;;  %v1127_v33 = vmul.f32 %v1797_v8, %v1118_v14  ;;  %v1136_v55 = vmul.f32 1.442695, %v1125_v43 }
0x1363   :  { %v1096_v11 = vadd.f32 %v1791_v44, %v1000_v52  ;;  %v1140_v42 = vmul.f32 1.442695, %v1127_v33 }
0x1365   :  { %v1112_v15 = vsub.f32 %v1096_v11, %v1104_v10 }
0x1367   :  { %v1120_v46 = vmax.f32 %v1112_v15, 0.0 }
0x1368   :  { %v974_v27 = vpop.xlane.xlu2 %973  ;;  %v977_v29 = vpop.xlane.xlu0 %976 }
0x1369   :  { %v1129_v13 = vmul.f32 %v1797_v8, %v1120_v46  ;;  %v994_v35 = vadd.f32 %v974_v27, %v910_v19  ;;  %v995_v36 = vadd.f32 %v977_v29, %v913_v18 }
0x136b   :  { %v1144_v39 = vmul.f32 1.442695, %v1129_v13  ;;  %v1090_v40 = vadd.f32 %v1791_v44, %v994_v35  ;;  %v1091_v41 = vadd.f32 %v1791_v44, %v995_v36 }
0x136d   :  { %1393 = vpow2.f32 %v1144_v39  ;;  %v1106_v47 = vsub.f32 %v1090_v40, %v1098_v23  ;;  %v1107_v1 = vsub.f32 %v1091_v41, %v1099_v25 }
0x136e   :  { %1395 = vpow2.f32 %v1142_v26 }
0x136f   :  { %v1114_v50 = vmax.f32 %v1106_v47, 0.0  ;;  %v1115_v30 = vmax.f32 %v1107_v1, 0.0  ;;  %1397 = vpow2.f32 %v1140_v42 }
0x1370   :  { %v907_v53 = vpop.xlane.xlu0 %906  ;;  %1399 = vpow2.f32 %v1138_v49 }
0x1371   :  { %v1123_v56 = vmul.f32 %v1797_v8, %v1114_v50  ;;  %v1124_v45 = vmul.f32 %v1797_v8, %v1115_v30  ;;  %v993_v9 = vadd.f32 %v971_v51, %v907_v53  ;;  %1401 = vpow2.f32 %v1136_v55 }
0x1373   :  { %v1394_v57 = vpop.eup %1393  ;;  %v1134_v59 = vmul.f32 1.442695, %v1124_v45  ;;  %v1089_v60 = vadd.f32 %v1791_v44, %v993_v9  ;;  %v1132_v24 = vmul.f32 1.442695, %v1123_v56 }
0x1374   :  { %1158 = vmatpush.msra.mxu1 %v1394_v57  ;;  %v1396_v21 = vpop.eup %1395 }
0x1375   :  { %v1105_v61 = vsub.f32 %v1089_v60, %v1097_v58  ;;  %v1398_v63 = vpop.eup %1397  ;;  %1403 = vpow2.f32 %v1134_v59 }
0x1376   :  { %1159 = vmatpush.msra.mxu1 %v1396_v21  ;;  %v1400_v0 = vpop.eup %1399  ;;  %1405 = vpow2.f32 %v1132_v24 }
0x1377   :  { %v1113_v38 = vmax.f32 %v1105_v61, 0.0  ;;  %v1402_v2 = vpop.eup %1401 }
0x1378   :  { %1160 = vmatpush.msra.mxu1 %v1398_v63 }
0x1379   :  { %v1122_v18 = vmul.f32 %v1797_v8, %v1113_v38  ;;  %v1170_v8 = vstv %s1218_s13 }
0x137a   :  { %1161 = vmatpush.msra.mxu1 %v1400_v0 }
0x137b   :  { %v1130_v4 = vmul.f32 1.442695, %v1122_v18  ;;  %v1404_v54 = vpop.eup %1403 }
0x137c   :  { %1162 = vmatpush.msra.mxu1 %v1402_v2  ;;  %v1406_v44 = vpop.eup %1405 }
0x137d   :  { %1407 = vpow2.f32 %v1130_v4 }
0x137e   :  { %1163 = vmatpush.msra.mxu1 %v1404_v54 }
0x1380   :  { %1164 = vmatpush.msra.mxu1 %v1406_v44 }
0x1383   :  { %v1408_v52 = vpop.eup %1407 }
0x1384   :  { %1165 = vmatpush.msra.mxu1 %v1408_v52 }
0x1385   :  { %1290 = vmatmul.msk.f32.vlgmr.msra.gmra.mxu1 %vm1146_vm0, %v64_v5 }
0x1402   :  { %v1167_v6 = vpop.f32.mrf.mxu1 }
0x1403   :  { %1291 = vmatmul.msk.f32.vlgmr.msrb.gmra.mxu3 %vm194_vm1, %v1167_v6 }
0x1486   :  { %v1191_v12 = vpop.f32.mrf.mxu3 }
0x1487   :  { %v1192_v10 = vadd.f32 %v1191_v12, %v1170_v8 }
0x1489   :  { %1196 = vperm.xlu2 %1306, %v1192_v10  }
0x14e3   :  { %v1197_v11 = vpop.permute.xlu2 %1196 }
0x14e4   :  { %1199 = vst [vmem:[#allocation7] sm:$0xff] %v1197_v11 }
0x14e5   :  { %1210 = dma.vmem_to_hbm [thread:$0]  %s1206_s15, 128, %s1208_s18, [#allocation4]  }
0x14e6   :  { %1473 = dma.done.wait [#allocation4], 128  }
0x14e7   :  { %1474 = vsyncadd [#allocation4], 4294967168 }
0x14e8   :  { %1215 = vsyncpa [#allocation3], 1 }
0x14e9   :  { %1216 = vsyncpa [#allocation4], 1 }
0x14ea   :  { %1217 = vsyncpa [#allocation5], 1 }

</bundles_post_ra>
